<compile_context>
chip_gen: v5e
topology: v5e:2x2
jax: 0.10.0
libtpu: 0.0.40
codegen_flags: <defaults>
</compile_context>

<pallas_src>
import functools

import jax
import jax.numpy as jnp
from jax.experimental import pallas as pl
from jax.experimental.pallas import tpu as pltpu

# Logical layer dims of the PyTorch module.
ENC_DIMS = [28 * 28, 128, 64, 12, 3]
DEC_DIMS = [3, 12, 64, 128, 28 * 28]
LAYER_DIMS = list(zip(ENC_DIMS[:-1], ENC_DIMS[1:])) + list(zip(DEC_DIMS[:-1], DEC_DIMS[1:]))

LANE = 128
F_IN = 28 * 28          # 784
F_PAD = 7 * LANE        # 896 = lane-padded feature dim
ENC_OUT_PAD = LANE      # encoded dim (3) padded to one full lane group

DEFAULT_TILE_B = 512    # right-sized for v7x's 64 MiB VMEM; fine on v5e/v6e too


def _round_up(x, m):
    return (x + m - 1) // m * m


def _pad_dim(d):
    return _round_up(d, LANE)


def autoencoder_kernel(x_ref, *refs):
    """refs = (w1, b1, ..., w8, b8, enc_ref, dec_ref).

    x / weights: bf16 (lane-padded); biases: f32; matmuls accumulate in f32 on
    the MXU; activations run on the f32 accumulator; outputs are f32.
    """
    param_refs = refs[:16]
    enc_ref, dec_ref = refs[16], refs[17]

    h = x_ref[...]                                           # (TILE_B, 896) bf16
    for i in range(8):
        w = param_refs[2 * i][...]                           # bf16 (in_pad, out_pad)
        b = param_refs[2 * i + 1][...]                       # f32  (1, out_pad)
        y = jnp.dot(h, w, preferred_element_type=jnp.float32) + b
        if i == 3:                                           # encoder head: no activation
            enc_ref[...] = y
            h = y.astype(jnp.bfloat16)
        elif i == 7:                                         # decoder head: sigmoid
            dec_ref[...] = jax.nn.sigmoid(y)
        else:                                                # hidden layers: tanh
            h = jnp.tanh(y).astype(jnp.bfloat16)


def make_params(key):
    """Deterministic PyTorch-style init: U(-1/sqrt(fan_in), 1/sqrt(fan_in)), f32."""
    params = []
    for fan_in, fan_out in LAYER_DIMS:
        key, kw, kb = jax.random.split(key, 3)
        bound = 1.0 / float(fan_in) ** 0.5
        w = jax.random.uniform(kw, (fan_in, fan_out), jnp.float32, -bound, bound)
        b = jax.random.uniform(kb, (1, fan_out), jnp.float32, -bound, bound)
        params.append((w, b))
    return params


def _pad_params(params):
    """Zero-pad every dim to a multiple of 128; weights -> bf16, biases stay f32."""
    padded = []
    for (fan_in, fan_out), (w, b) in zip(LAYER_DIMS, params):
        in_p, out_p = _pad_dim(fan_in), _pad_dim(fan_out)
        w_p = jnp.zeros((in_p, out_p), jnp.bfloat16).at[:fan_in, :fan_out].set(
            w.astype(jnp.bfloat16))
        b_p = jnp.zeros((1, out_p), jnp.float32).at[:, :fan_out].set(b)
        padded.append((w_p, b_p))
    return padded


@functools.partial(jax.jit, static_argnames=("tile_b",))
def autoencoder_forward(x, params, *, tile_b=DEFAULT_TILE_B):
    B = x.shape[0]
    tile_b = min(tile_b, _round_up(max(B, 1), 16))   # 16-row min: safe for bf16 tiling
    b_pad = _round_up(B, tile_b)
    num_tiles = b_pad // tile_b

    # Lane-pad features (784 -> 896), pad the batch to a whole number of tiles,
    # and cast the activations to bf16 for the MXU.
    x_p = jnp.zeros((b_pad, F_PAD), jnp.bfloat16).at[:B, :F_IN].set(
        x.astype(jnp.bfloat16))

    padded = _pad_params(params)
    flat = [x_p]
    in_specs = [pl.BlockSpec((tile_b, F_PAD), lambda i: (i, 0))]
    for w_p, b_p in padded:
        flat.extend([w_p, b_p])
        # Weights/biases: full-array blocks whose index never changes -> fetched
        # once, VMEM-resident across all grid steps.
        in_specs.append(pl.BlockSpec(w_p.shape, lambda i: (0, 0)))
        in_specs.append(pl.BlockSpec(b_p.shape, lambda i: (0, 0)))

    macs = sum(_pad_dim(fi) * _pad_dim(fo) for fi, fo in LAYER_DIMS)
    param_bytes = sum(w.size * 2 + b.size * 4 for w, b in padded)
    cost = pl.CostEstimate(
        flops=2 * b_pad * macs,
        transcendentals=b_pad * (6 * LANE + F_PAD),
        bytes_accessed=x_p.size * 2 + b_pad * (ENC_OUT_PAD + F_PAD) * 4 + param_bytes,
    )

    enc_p, dec_p = pl.pallas_call(
        autoencoder_kernel,
        grid=(num_tiles,),
        in_specs=in_specs,
        out_specs=(
            pl.BlockSpec((tile_b, ENC_OUT_PAD), lambda i: (i, 0)),
            pl.BlockSpec((tile_b, F_PAD), lambda i: (i, 0)),
        ),
        out_shape=(
            jax.ShapeDtypeStruct((b_pad, ENC_OUT_PAD), jnp.float32),  # encoded (padded)
            jax.ShapeDtypeStruct((b_pad, F_PAD), jnp.float32),        # decoded (padded)
        ),
        compiler_params=pltpu.CompilerParams(dimension_semantics=("parallel",)),
        cost_estimate=cost,
    )(*flat)

    return enc_p[:B, :3], dec_p[:B, :F_IN]


def reference_forward_f32(x, params):
    """Pure-f32 reference matching the PyTorch module exactly."""
    h = x
    enc = None
    for i, (w, b) in enumerate(params):
        h = h @ w + b
        if i == 3:
            enc = h
        elif i == 7:
            h = jax.nn.sigmoid(h)
        else:
            h = jnp.tanh(h)
    return enc, h


def reference_forward_bf16(x, params):
    """Reference mirroring the kernel's bf16-operand / f32-accumulate arithmetic."""
    h = x.astype(jnp.bfloat16)
    enc = dec = None
    for i, (w, b) in enumerate(params):
        y = jnp.dot(h, w.astype(jnp.bfloat16), preferred_element_type=jnp.float32) + b
        if i == 3:
            enc = y
            h = y.astype(jnp.bfloat16)
        elif i == 7:
            dec = jax.nn.sigmoid(y)
        else:
            h = jnp.tanh(y).astype(jnp.bfloat16)
    return enc, dec


if __name__ == "__main__":
    key = jax.random.PRNGKey(0)
    k_params, k_x = jax.random.split(key)

    params = make_params(k_params)
    B = 8
    x = jax.random.uniform(k_x, (B, F_IN), jnp.float32)  # MNIST-like pixels in [0, 1)

    encoded, decoded = autoencoder_forward(x, params)
    jax.block_until_ready((encoded, decoded))

    assert encoded.shape == (B, 3) and decoded.shape == (B, F_IN)

    # Tight check against a reference with identical bf16/f32 mixed precision.
    enc_bf, dec_bf = reference_forward_bf16(x, params)
    assert jnp.allclose(encoded, enc_bf, atol=2e-3, rtol=2e-3)
    assert jnp.allclose(decoded, dec_bf, atol=2e-3, rtol=2e-3)

    # Loose sanity check against the pure-f32 PyTorch-equivalent forward.
    enc_f32, dec_f32 = reference_forward_f32(x, params)
    assert jnp.allclose(encoded, enc_f32, atol=7e-2, rtol=7e-2)
    assert jnp.allclose(decoded, dec_f32, atol=7e-2, rtol=7e-2)

    print("KERNEL_OK")
</pallas_src>

<mosaic_0001>
module attributes {stable_mosaic.version = 11 : i64} {
  func.func @autoencoder_kernel(%arg0: i32, %arg1: memref<16x896xbf16, #tpu.memory_space<vmem>>, %arg2: memref<896x128xbf16, #tpu.memory_space<vmem>>, %arg3: memref<1x128xf32, #tpu.memory_space<vmem>>, %arg4: memref<128x128xbf16, #tpu.memory_space<vmem>>, %arg5: memref<1x128xf32, #tpu.memory_space<vmem>>, %arg6: memref<128x128xbf16, #tpu.memory_space<vmem>>, %arg7: memref<1x128xf32, #tpu.memory_space<vmem>>, %arg8: memref<128x128xbf16, #tpu.memory_space<vmem>>, %arg9: memref<1x128xf32, #tpu.memory_space<vmem>>, %arg10: memref<128x128xbf16, #tpu.memory_space<vmem>>, %arg11: memref<1x128xf32, #tpu.memory_space<vmem>>, %arg12: memref<128x128xbf16, #tpu.memory_space<vmem>>, %arg13: memref<1x128xf32, #tpu.memory_space<vmem>>, %arg14: memref<128x128xbf16, #tpu.memory_space<vmem>>, %arg15: memref<1x128xf32, #tpu.memory_space<vmem>>, %arg16: memref<128x896xbf16, #tpu.memory_space<vmem>>, %arg17: memref<1x896xf32, #tpu.memory_space<vmem>>, %arg18: memref<16x128xf32, #tpu.memory_space<vmem>>, %arg19: memref<16x896xf32, #tpu.memory_space<vmem>>) attributes {dimension_semantics = [#tpu.dimension_semantics<parallel>], iteration_bounds = array<i64: 1>, scalar_prefetch = 0 : i64, scratch_operands = 0 : i64, tpu.core_type = #tpu.core_type<tc>, window_params = [{transform_indices = @transform_0, window_bounds = array<i64: 16, 896>}, {pipeline_mode = #tpu.pipeline_mode<synchronous>, transform_indices = @transform_1, window_bounds = array<i64: 896, 128>}, {pipeline_mode = #tpu.pipeline_mode<synchronous>, transform_indices = @transform_2, window_bounds = array<i64: 1, 128>}, {pipeline_mode = #tpu.pipeline_mode<synchronous>, transform_indices = @transform_3, window_bounds = array<i64: 128, 128>}, {pipeline_mode = #tpu.pipeline_mode<synchronous>, transform_indices = @transform_4, window_bounds = array<i64: 1, 128>}, {pipeline_mode = #tpu.pipeline_mode<synchronous>, transform_indices = @transform_5, window_bounds = array<i64: 128, 128>}, {pipeline_mode = #tpu.pipeline_mode<synchronous>, transform_indices = @transform_6, window_bounds = array<i64: 1, 128>}, {pipeline_mode = #tpu.pipeline_mode<synchronous>, transform_indices = @transform_7, window_bounds = array<i64: 128, 128>}, {pipeline_mode = #tpu.pipeline_mode<synchronous>, transform_indices = @transform_8, window_bounds = array<i64: 1, 128>}, {pipeline_mode = #tpu.pipeline_mode<synchronous>, transform_indices = @transform_9, window_bounds = array<i64: 128, 128>}, {pipeline_mode = #tpu.pipeline_mode<synchronous>, transform_indices = @transform_10, window_bounds = array<i64: 1, 128>}, {pipeline_mode = #tpu.pipeline_mode<synchronous>, transform_indices = @transform_11, window_bounds = array<i64: 128, 128>}, {pipeline_mode = #tpu.pipeline_mode<synchronous>, transform_indices = @transform_12, window_bounds = array<i64: 1, 128>}, {pipeline_mode = #tpu.pipeline_mode<synchronous>, transform_indices = @transform_13, window_bounds = array<i64: 128, 128>}, {pipeline_mode = #tpu.pipeline_mode<synchronous>, transform_indices = @transform_14, window_bounds = array<i64: 1, 128>}, {pipeline_mode = #tpu.pipeline_mode<synchronous>, transform_indices = @transform_15, window_bounds = array<i64: 128, 896>}, {pipeline_mode = #tpu.pipeline_mode<synchronous>, transform_indices = @transform_16, window_bounds = array<i64: 1, 896>}, {transform_indices = @transform_17, window_bounds = array<i64: 16, 128>}, {transform_indices = @transform_18, window_bounds = array<i64: 16, 896>}]} {
    %c0 = arith.constant 0 : index
    %c0_0 = arith.constant 0 : index
    %0 = vector.load %arg1[%c0, %c0_0] : memref<16x896xbf16, #tpu.memory_space<vmem>>, vector<16x896xbf16>
    %c0_1 = arith.constant 0 : index
    %c0_2 = arith.constant 0 : index
    %1 = vector.load %arg2[%c0_1, %c0_2] : memref<896x128xbf16, #tpu.memory_space<vmem>>, vector<896x128xbf16>
    %c0_3 = arith.constant 0 : index
    %c0_4 = arith.constant 0 : index
    %2 = vector.load %arg3[%c0_3, %c0_4] : memref<1x128xf32, #tpu.memory_space<vmem>>, vector<1x128xf32>
    %cst = arith.constant dense<0.000000e+00> : vector<16x128xf32>
    %3 = tpu.matmul %0, %1, %cst {dimension_numbers = #tpu.dot_dimension_numbers<[1], [0], [0], [1], [0, 0, 1, 1], [], []>} : vector<16x896xbf16>, vector<896x128xbf16>, vector<16x128xf32> -> vector<16x128xf32>
    %4 = vector.broadcast %2 : vector<1x128xf32> to vector<16x128xf32>
    %5 = arith.addf %3, %4 : vector<16x128xf32>
    %6 = math.tanh %5 : vector<16x128xf32>
    %7 = arith.truncf %6 : vector<16x128xf32> to vector<16x128xbf16>
    %c0_5 = arith.constant 0 : index
    %c0_6 = arith.constant 0 : index
    %8 = vector.load %arg4[%c0_5, %c0_6] : memref<128x128xbf16, #tpu.memory_space<vmem>>, vector<128x128xbf16>
    %c0_7 = arith.constant 0 : index
    %c0_8 = arith.constant 0 : index
    %9 = vector.load %arg5[%c0_7, %c0_8] : memref<1x128xf32, #tpu.memory_space<vmem>>, vector<1x128xf32>
    %cst_9 = arith.constant dense<0.000000e+00> : vector<16x128xf32>
    %10 = tpu.matmul %7, %8, %cst_9 {dimension_numbers = #tpu.dot_dimension_numbers<[1], [0], [0], [1], [0, 0, 1, 1], [], []>} : vector<16x128xbf16>, vector<128x128xbf16>, vector<16x128xf32> -> vector<16x128xf32>
    %11 = vector.broadcast %9 : vector<1x128xf32> to vector<16x128xf32>
    %12 = arith.addf %10, %11 : vector<16x128xf32>
    %13 = math.tanh %12 : vector<16x128xf32>
    %14 = arith.truncf %13 : vector<16x128xf32> to vector<16x128xbf16>
    %c0_10 = arith.constant 0 : index
    %c0_11 = arith.constant 0 : index
    %15 = vector.load %arg6[%c0_10, %c0_11] : memref<128x128xbf16, #tpu.memory_space<vmem>>, vector<128x128xbf16>
    %c0_12 = arith.constant 0 : index
    %c0_13 = arith.constant 0 : index
    %16 = vector.load %arg7[%c0_12, %c0_13] : memref<1x128xf32, #tpu.memory_space<vmem>>, vector<1x128xf32>
    %cst_14 = arith.constant dense<0.000000e+00> : vector<16x128xf32>
    %17 = tpu.matmul %14, %15, %cst_14 {dimension_numbers = #tpu.dot_dimension_numbers<[1], [0], [0], [1], [0, 0, 1, 1], [], []>} : vector<16x128xbf16>, vector<128x128xbf16>, vector<16x128xf32> -> vector<16x128xf32>
    %18 = vector.broadcast %16 : vector<1x128xf32> to vector<16x128xf32>
    %19 = arith.addf %17, %18 : vector<16x128xf32>
    %20 = math.tanh %19 : vector<16x128xf32>
    %21 = arith.truncf %20 : vector<16x128xf32> to vector<16x128xbf16>
    %c0_15 = arith.constant 0 : index
    %c0_16 = arith.constant 0 : index
    %22 = vector.load %arg8[%c0_15, %c0_16] : memref<128x128xbf16, #tpu.memory_space<vmem>>, vector<128x128xbf16>
    %c0_17 = arith.constant 0 : index
    %c0_18 = arith.constant 0 : index
    %23 = vector.load %arg9[%c0_17, %c0_18] : memref<1x128xf32, #tpu.memory_space<vmem>>, vector<1x128xf32>
    %cst_19 = arith.constant dense<0.000000e+00> : vector<16x128xf32>
    %24 = tpu.matmul %21, %22, %cst_19 {dimension_numbers = #tpu.dot_dimension_numbers<[1], [0], [0], [1], [0, 0, 1, 1], [], []>} : vector<16x128xbf16>, vector<128x128xbf16>, vector<16x128xf32> -> vector<16x128xf32>
    %25 = vector.broadcast %23 : vector<1x128xf32> to vector<16x128xf32>
    %26 = arith.addf %24, %25 : vector<16x128xf32>
    %c0_20 = arith.constant 0 : index
    %c0_21 = arith.constant 0 : index
    %27 = vector.load %arg18[%c0_20, %c0_21] : memref<16x128xf32, #tpu.memory_space<vmem>>, vector<16x128xf32>
    tpu.vector_store %arg18[%c0_20, %c0_21], %26 {strides = array<i32>} : memref<16x128xf32, #tpu.memory_space<vmem>>, vector<16x128xf32>,
    %28 = arith.truncf %26 : vector<16x128xf32> to vector<16x128xbf16>
    %c0_22 = arith.constant 0 : index
    %c0_23 = arith.constant 0 : index
    %29 = vector.load %arg10[%c0_22, %c0_23] : memref<128x128xbf16, #tpu.memory_space<vmem>>, vector<128x128xbf16>
    %c0_24 = arith.constant 0 : index
    %c0_25 = arith.constant 0 : index
    %30 = vector.load %arg11[%c0_24, %c0_25] : memref<1x128xf32, #tpu.memory_space<vmem>>, vector<1x128xf32>
    %cst_26 = arith.constant dense<0.000000e+00> : vector<16x128xf32>
    %31 = tpu.matmul %28, %29, %cst_26 {dimension_numbers = #tpu.dot_dimension_numbers<[1], [0], [0], [1], [0, 0, 1, 1], [], []>} : vector<16x128xbf16>, vector<128x128xbf16>, vector<16x128xf32> -> vector<16x128xf32>
    %32 = vector.broadcast %30 : vector<1x128xf32> to vector<16x128xf32>
    %33 = arith.addf %31, %32 : vector<16x128xf32>
    %34 = math.tanh %33 : vector<16x128xf32>
    %35 = arith.truncf %34 : vector<16x128xf32> to vector<16x128xbf16>
    %c0_27 = arith.constant 0 : index
    %c0_28 = arith.constant 0 : index
    %36 = vector.load %arg12[%c0_27, %c0_28] : memref<128x128xbf16, #tpu.memory_space<vmem>>, vector<128x128xbf16>
    %c0_29 = arith.constant 0 : index
    %c0_30 = arith.constant 0 : index
    %37 = vector.load %arg13[%c0_29, %c0_30] : memref<1x128xf32, #tpu.memory_space<vmem>>, vector<1x128xf32>
    %cst_31 = arith.constant dense<0.000000e+00> : vector<16x128xf32>
    %38 = tpu.matmul %35, %36, %cst_31 {dimension_numbers = #tpu.dot_dimension_numbers<[1], [0], [0], [1], [0, 0, 1, 1], [], []>} : vector<16x128xbf16>, vector<128x128xbf16>, vector<16x128xf32> -> vector<16x128xf32>
    %39 = vector.broadcast %37 : vector<1x128xf32> to vector<16x128xf32>
    %40 = arith.addf %38, %39 : vector<16x128xf32>
    %41 = math.tanh %40 : vector<16x128xf32>
    %42 = arith.truncf %41 : vector<16x128xf32> to vector<16x128xbf16>
    %c0_32 = arith.constant 0 : index
    %c0_33 = arith.constant 0 : index
    %43 = vector.load %arg14[%c0_32, %c0_33] : memref<128x128xbf16, #tpu.memory_space<vmem>>, vector<128x128xbf16>
    %c0_34 = arith.constant 0 : index
    %c0_35 = arith.constant 0 : index
    %44 = vector.load %arg15[%c0_34, %c0_35] : memref<1x128xf32, #tpu.memory_space<vmem>>, vector<1x128xf32>
    %cst_36 = arith.constant dense<0.000000e+00> : vector<16x128xf32>
    %45 = tpu.matmul %42, %43, %cst_36 {dimension_numbers = #tpu.dot_dimension_numbers<[1], [0], [0], [1], [0, 0, 1, 1], [], []>} : vector<16x128xbf16>, vector<128x128xbf16>, vector<16x128xf32> -> vector<16x128xf32>
    %46 = vector.broadcast %44 : vector<1x128xf32> to vector<16x128xf32>
    %47 = arith.addf %45, %46 : vector<16x128xf32>
    %48 = math.tanh %47 : vector<16x128xf32>
    %49 = arith.truncf %48 : vector<16x128xf32> to vector<16x128xbf16>
    %c0_37 = arith.constant 0 : index
    %c0_38 = arith.constant 0 : index
    %50 = vector.load %arg16[%c0_37, %c0_38] : memref<128x896xbf16, #tpu.memory_space<vmem>>, vector<128x896xbf16>
    %c0_39 = arith.constant 0 : index
    %c0_40 = arith.constant 0 : index
    %51 = vector.load %arg17[%c0_39, %c0_40] : memref<1x896xf32, #tpu.memory_space<vmem>>, vector<1x896xf32>
    %cst_41 = arith.constant dense<0.000000e+00> : vector<16x896xf32>
    %52 = tpu.matmul %49, %50, %cst_41 {dimension_numbers = #tpu.dot_dimension_numbers<[1], [0], [0], [1], [0, 0, 1, 1], [], []>} : vector<16x128xbf16>, vector<128x896xbf16>, vector<16x896xf32> -> vector<16x896xf32>
    %53 = vector.broadcast %51 : vector<1x896xf32> to vector<16x896xf32>
    %54 = arith.addf %52, %53 : vector<16x896xf32>
    %55 = arith.negf %54 : vector<16x896xf32>
    %56 = math.exp %55 : vector<16x896xf32>
    %cst_42 = arith.constant 1.000000e+00 : f32
    %57 = vector.broadcast %cst_42 : f32 to vector<16x896xf32>
    %58 = arith.addf %57, %56 : vector<16x896xf32>
    %59 = arith.divf %57, %58 : vector<16x896xf32>
    %c0_43 = arith.constant 0 : index
    %c0_44 = arith.constant 0 : index
    %60 = vector.load %arg19[%c0_43, %c0_44] : memref<16x896xf32, #tpu.memory_space<vmem>>, vector<16x896xf32>
    tpu.vector_store %arg19[%c0_43, %c0_44], %59 {strides = array<i32>} : memref<16x896xf32, #tpu.memory_space<vmem>>, vector<16x896xf32>,
    return
  }
  func.func @transform_0(%arg0: i32) -> (i32, i32) {
    %c0_i32 = arith.constant 0 : i32
    %c0_i32_0 = arith.constant 0 : i32
    return %arg0, %c0_i32 : i32, i32
  }
  func.func @transform_1(%arg0: i32) -> (i32, i32) {
    %c0_i32 = arith.constant 0 : i32
    %c0_i32_0 = arith.constant 0 : i32
    %c0_i32_1 = arith.constant 0 : i32
    return %c0_i32, %c0_i32_0 : i32, i32
  }
  func.func @transform_2(%arg0: i32) -> (i32, i32) {
    %c0_i32 = arith.constant 0 : i32
    %c0_i32_0 = arith.constant 0 : i32
    %c0_i32_1 = arith.constant 0 : i32
    return %c0_i32, %c0_i32_0 : i32, i32
  }
  func.func @transform_3(%arg0: i32) -> (i32, i32) {
    %c0_i32 = arith.constant 0 : i32
    %c0_i32_0 = arith.constant 0 : i32
    %c0_i32_1 = arith.constant 0 : i32
    return %c0_i32, %c0_i32_0 : i32, i32
  }
  func.func @transform_4(%arg0: i32) -> (i32, i32) {
    %c0_i32 = arith.constant 0 : i32
    %c0_i32_0 = arith.constant 0 : i32
    %c0_i32_1 = arith.constant 0 : i32
    return %c0_i32, %c0_i32_0 : i32, i32
  }
  func.func @transform_5(%arg0: i32) -> (i32, i32) {
    %c0_i32 = arith.constant 0 : i32
    %c0_i32_0 = arith.constant 0 : i32
    %c0_i32_1 = arith.constant 0 : i32
    return %c0_i32, %c0_i32_0 : i32, i32
  }
  func.func @transform_6(%arg0: i32) -> (i32, i32) {
    %c0_i32 = arith.constant 0 : i32
    %c0_i32_0 = arith.constant 0 : i32
    %c0_i32_1 = arith.constant 0 : i32
    return %c0_i32, %c0_i32_0 : i32, i32
  }
  func.func @transform_7(%arg0: i32) -> (i32, i32) {
    %c0_i32 = arith.constant 0 : i32
    %c0_i32_0 = arith.constant 0 : i32
    %c0_i32_1 = arith.constant 0 : i32
    return %c0_i32, %c0_i32_0 : i32, i32
  }
  func.func @transform_8(%arg0: i32) -> (i32, i32) {
    %c0_i32 = arith.constant 0 : i32
    %c0_i32_0 = arith.constant 0 : i32
    %c0_i32_1 = arith.constant 0 : i32
    return %c0_i32, %c0_i32_0 : i32, i32
  }
  func.func @transform_9(%arg0: i32) -> (i32, i32) {
    %c0_i32 = arith.constant 0 : i32
    %c0_i32_0 = arith.constant 0 : i32
    %c0_i32_1 = arith.constant 0 : i32
    return %c0_i32, %c0_i32_0 : i32, i32
  }
  func.func @transform_10(%arg0: i32) -> (i32, i32) {
    %c0_i32 = arith.constant 0 : i32
    %c0_i32_0 = arith.constant 0 : i32
    %c0_i32_1 = arith.constant 0 : i32
    return %c0_i32, %c0_i32_0 : i32, i32
  }
  func.func @transform_11(%arg0: i32) -> (i32, i32) {
    %c0_i32 = arith.constant 0 : i32
    %c0_i32_0 = arith.constant 0 : i32
    %c0_i32_1 = arith.constant 0 : i32
    return %c0_i32, %c0_i32_0 : i32, i32
  }
  func.func @transform_12(%arg0: i32) -> (i32, i32) {
    %c0_i32 = arith.constant 0 : i32
    %c0_i32_0 = arith.constant 0 : i32
    %c0_i32_1 = arith.constant 0 : i32
    return %c0_i32, %c0_i32_0 : i32, i32
  }
  func.func @transform_13(%arg0: i32) -> (i32, i32) {
    %c0_i32 = arith.constant 0 : i32
    %c0_i32_0 = arith.constant 0 : i32
    %c0_i32_1 = arith.constant 0 : i32
    return %c0_i32, %c0_i32_0 : i32, i32
  }
  func.func @transform_14(%arg0: i32) -> (i32, i32) {
    %c0_i32 = arith.constant 0 : i32
    %c0_i32_0 = arith.constant 0 : i32
    %c0_i32_1 = arith.constant 0 : i32
    return %c0_i32, %c0_i32_0 : i32, i32
  }
  func.func @transform_15(%arg0: i32) -> (i32, i32) {
    %c0_i32 = arith.constant 0 : i32
    %c0_i32_0 = arith.constant 0 : i32
    %c0_i32_1 = arith.constant 0 : i32
    return %c0_i32, %c0_i32_0 : i32, i32
  }
  func.func @transform_16(%arg0: i32) -> (i32, i32) {
    %c0_i32 = arith.constant 0 : i32
    %c0_i32_0 = arith.constant 0 : i32
    %c0_i32_1 = arith.constant 0 : i32
    return %c0_i32, %c0_i32_0 : i32, i32
  }
  func.func @transform_17(%arg0: i32) -> (i32, i32) {
    %c0_i32 = arith.constant 0 : i32
    %c0_i32_0 = arith.constant 0 : i32
    return %arg0, %c0_i32 : i32, i32
  }
  func.func @transform_18(%arg0: i32) -> (i32, i32) {
    %c0_i32 = arith.constant 0 : i32
    %c0_i32_0 = arith.constant 0 : i32
    return %arg0, %c0_i32 : i32, i32
  }
}

</mosaic_0001>

<bundles_post_ra>
// kernel: autoencoder_forward.1
= control target key start
LH: loop header
LB: loop body
LE: loop exit
PB: predicated region body
PF: predicated region fallthrough
CT: control target
= control target key end

     0   :  { %s3897_s1 = inlined_call_operand.vmem [shape: bf16[896,128], index: 1, kind: input, shape index: {}]   ;;  %s3898_s2 = inlined_call_operand.vmem [shape: f32[1,128], index: 2, kind: input, shape index: {}]   ;;  %s3899_s0 = inlined_call_operand.vmem [shape: bf16[16,896], index: 0, kind: input, shape index: {}]   ;;  %s3900_s4 = inlined_call_operand.vmem [shape: f32[1,128], index: 4, kind: input, shape index: {}]   ;;  %s3901_s3 = inlined_call_operand.vmem [shape: bf16[128,128], index: 3, kind: input, shape index: {}]   ;;  %s3902_s5 = inlined_call_operand.vmem [shape: bf16[128,128], index: 5, kind: input, shape index: {}]   ;;  %s3903_s6 = inlined_call_operand.vmem [shape: f32[1,128], index: 6, kind: input, shape index: {}]   ;;  %s3904_s7 = inlined_call_operand.vmem [shape: bf16[128,128], index: 7, kind: input, shape index: {}]   ;;  %s3905_s8 = inlined_call_operand.vmem [shape: f32[1,128], index: 8, kind: input, shape index: {}]   ;;  %s3906_s9 = inlined_call_operand.vmem [shape: bf16[128,128], index: 9, kind: input, shape index: {}]   ;;  %s3907_s10 = inlined_call_operand.vmem [shape: f32[1,128], index: 10, kind: input, shape index: {}]   ;;  %s3908_s11 = inlined_call_operand.vmem [shape: bf16[128,128], index: 11, kind: input, shape index: {}]   ;;  %s3909_s17 = inlined_call_operand.vmem [shape: f32[16,128], index: 17, kind: output, shape index: {0}]   ;;  %s3910_s12 = inlined_call_operand.vmem [shape: f32[1,128], index: 12, kind: input, shape index: {}]   ;;  %s3911_s13 = inlined_call_operand.vmem [shape: bf16[128,128], index: 13, kind: input, shape index: {}]   ;;  %s3912_s14 = inlined_call_operand.vmem [shape: f32[1,128], index: 14, kind: input, shape index: {}]   ;;  %s3913_s15 = inlined_call_operand.vmem [shape: bf16[128,896], index: 15, kind: input, shape index: {}]   ;;  %s3914_s16 = inlined_call_operand.vmem [shape: f32[1,896], index: 16, kind: input, shape index: {}]   ;;  %s3915_s18 = inlined_call_operand.vmem [shape: f32[16,896], index: 18, kind: output, shape index: {1}]  }
   0x1   :  { %3918 = sst [smem:[#allocation2_spill]] %s3897_s1 }
   0x2   :  { %3919 = sst [smem:[#allocation3_spill]] %s3898_s2 }
   0x3   :  { %3920 = sst [smem:[#allocation4_spill]] %s3899_s0 }
   0x4   :  { %s3921_s29 = sld [smem:[#allocation2_spill]] }
   0x5   :  { %s3922_s23 = sld [smem:[#allocation4_spill]] }
   0x6   :  { %s3923_s22 = sld [smem:[#allocation3_spill]] }
   0xa   :  { %v2615_v0 = vld [vmem:[%s3921_s29 + $0x38] sm:$0xff]  ;;  %v2614_v3 = vld [vmem:[%s3921_s29 + $0x30] sm:$0xff]  ;;  %v2613_v8 = vld [vmem:[%s3921_s29 + $0x28] sm:$0xff] }
   0xb   :  { %v2623_v1 = vld [vmem:[%s3921_s29 + $0x78] sm:$0xff]  ;;  %554 = vmatpush.bf16.msra.mxu0 %v2615_v0  ;;  %v2622_v4 = vld [vmem:[%s3921_s29 + $0x70] sm:$0xff]  ;;  %v2621_v9 = vld [vmem:[%s3921_s29 + $0x68] sm:$0xff] }
   0xc   :  { %v2631_v2 = vld [vmem:[%s3921_s29 + $0xb8] sm:$0xff]  ;;  %568 = vmatpush.bf16.msra.mxu1 %v2623_v1  ;;  %v2630_v6 = vld [vmem:[%s3921_s29 + $0xb0] sm:$0xff]  ;;  %v2629_v10 = vld [vmem:[%s3921_s29 + $0xa8] sm:$0xff] }
   0xd   :  { %v2639_v5 = vld [vmem:[%s3921_s29 + $0xf8] sm:$0xff]  ;;  %582 = vmatpush.bf16.msra.mxu2 %v2631_v2  ;;  %v2638_v7 = vld [vmem:[%s3921_s29 + $0xf0] sm:$0xff]  ;;  %v2637_v11 = vld [vmem:[%s3921_s29 + $0xe8] sm:$0xff] }
   0xe   :  { %596 = vmatpush.bf16.msra.mxu3 %v2639_v5  ;;  %v2612_v12 = vld [vmem:[%s3921_s29 + $0x20] sm:$0xff]  ;;  %v2611_v16 = vld [vmem:[%s3921_s29 + $0x18] sm:$0xff]  ;;  %v2610_v20 = vld [vmem:[%s3921_s29 + $0x10] sm:$0xff] }
   0xf   :  { %555 = vmatpush.bf16.msra.mxu0 %v2614_v3  ;;  %v2620_v13 = vld [vmem:[%s3921_s29 + $0x60] sm:$0xff]  ;;  %v2619_v17 = vld [vmem:[%s3921_s29 + $0x58] sm:$0xff]  ;;  %v2618_v21 = vld [vmem:[%s3921_s29 + $0x50] sm:$0xff] }
  0x10   :  { %569 = vmatpush.bf16.msra.mxu1 %v2622_v4  ;;  %v2628_v14 = vld [vmem:[%s3921_s29 + $0xa0] sm:$0xff]  ;;  %v2627_v18 = vld [vmem:[%s3921_s29 + $0x98] sm:$0xff]  ;;  %v2626_v22 = vld [vmem:[%s3921_s29 + $0x90] sm:$0xff] }
  0x11   :  { %583 = vmatpush.bf16.msra.mxu2 %v2630_v6  ;;  %v2636_v15 = vld [vmem:[%s3921_s29 + $0xe0] sm:$0xff]  ;;  %v2635_v19 = vld [vmem:[%s3921_s29 + $0xd8] sm:$0xff]  ;;  %v2634_v23 = vld [vmem:[%s3921_s29 + $0xd0] sm:$0xff] }
  0x12   :  { %597 = vmatpush.bf16.msra.mxu3 %v2638_v7  ;;  %v2609_v24 = vld [vmem:[%s3921_s29 + $0x8] sm:$0xff]  ;;  %v2608_v27 = vld [vmem:[%s3921_s29] sm:$0xff]  ;;  %v2647_v31 = vld [vmem:[%s3921_s29 + $0x138] sm:$0xff] }
  0x13   :  { %556 = vmatpush.bf16.msra.mxu0 %v2613_v8  ;;  %v2617_v25 = vld [vmem:[%s3921_s29 + $0x48] sm:$0xff]  ;;  %v2616_v29 = vld [vmem:[%s3921_s29 + $0x40] sm:$0xff]  ;;  %v2604_v34 = vld [vmem:[%s3922_s23 + $0x18] sm:$0xf0] }
  0x14   :  { %570 = vmatpush.bf16.msra.mxu1 %v2621_v9  ;;  %v2625_v26 = vld [vmem:[%s3921_s29 + $0x88] sm:$0xff]  ;;  %v2624_v30 = vld [vmem:[%s3921_s29 + $0x80] sm:$0xff]  ;;  %v2655_v38 = vld [vmem:[%s3921_s29 + $0x178] sm:$0xff] }
  0x15   :  { %584 = vmatpush.bf16.msra.mxu2 %v2629_v10  ;;  %v2633_v28 = vld [vmem:[%s3921_s29 + $0xc8] sm:$0xff]  ;;  %v1921_v33 = vld [vmem:[%s3922_s23] sm:$0xf]  ;;  %v2605_v35 = vld [vmem:[%s3922_s23 + $0x20] sm:$0xf0] }
  0x16   :  { %598 = vmatpush.bf16.msra.mxu3 %v2637_v11  ;;  %v1929_v32 = vld [vmem:[%s3922_s23 + $0x8] sm:$0xf]  ;;  %v2601_v36 = vld [vmem:[%s3922_s23 + $0x4] sm:$0xf]  ;;  %v1923_v37 = vld [vmem:[%s3922_s23 + $0x1c] sm:$0xf0]  ;;  %v1922_v41 = vor.u32 %v2604_v34, %v1921_v33 }
  0x17   :  { %557 = vmatpush.bf16.msra.mxu0 %v2612_v12  ;;  %v2663_v39 = vld [vmem:[%s3921_s29 + $0x1b8] sm:$0xff]  ;;  %v2632_v40 = vld [vmem:[%s3921_s29 + $0xc0] sm:$0xff]  ;;  %v1930_v42 = vor.u32 %v2605_v35, %v1929_v32  ;;  %v2602_v43 = vld [vmem:[%s3922_s23 + $0xc] sm:$0xf]  ;;  %v1926_v45 = vor.u32 %v2601_v36, %v1923_v37 }
  0x18   :  { %571 = vmatpush.bf16.msra.mxu1 %v2620_v13  ;;  %v1931_v44 = vld [vmem:[%s3922_s23 + $0x24] sm:$0xf0]  ;;  %v2646_v46 = vld [vmem:[%s3921_s29 + $0x130] sm:$0xff]  ;;  %v2644_v53 = vld [vmem:[%s3921_s29 + $0x120] sm:$0xff] }
  0x19   :  { %585 = vmatpush.bf16.msra.mxu2 %v2628_v14  ;;  %v2654_v47 = vld [vmem:[%s3921_s29 + $0x170] sm:$0xff]  ;;  %v1934_v49 = vor.u32 %v2602_v43, %v1931_v44  ;;  %v2645_v50 = vld [vmem:[%s3921_s29 + $0x128] sm:$0xff]  ;;  %v2652_v54 = vld [vmem:[%s3921_s29 + $0x160] sm:$0xff] }
  0x1a   :  { %599 = vmatpush.bf16.msra.mxu3 %v2636_v15  ;;  %v2662_v48 = vld [vmem:[%s3921_s29 + $0x1b0] sm:$0xff]  ;;  %v2653_v51 = vld [vmem:[%s3921_s29 + $0x168] sm:$0xff]  ;;  %v2660_v55 = vld [vmem:[%s3921_s29 + $0x1a0] sm:$0xff] }
  0x1b   :  { %558 = vmatpush.bf16.msra.mxu0 %v2611_v16  ;;  %v2661_v52 = vld [vmem:[%s3921_s29 + $0x1a8] sm:$0xff]  ;;  %v2643_v56 = vld [vmem:[%s3921_s29 + $0x118] sm:$0xff]  ;;  %v2642_v59 = vld [vmem:[%s3921_s29 + $0x110] sm:$0xff] }
  0x1c   :  { %572 = vmatpush.bf16.msra.mxu1 %v2619_v17  ;;  %v2651_v57 = vld [vmem:[%s3921_s29 + $0x158] sm:$0xff]  ;;  %v2650_v60 = vld [vmem:[%s3921_s29 + $0x150] sm:$0xff]  ;;  %v2641_v62 = vld [vmem:[%s3921_s29 + $0x108] sm:$0xff] }
  0x1d   :  { %586 = vmatpush.bf16.msra.mxu2 %v2627_v18  ;;  %v2659_v58 = vld [vmem:[%s3921_s29 + $0x198] sm:$0xff]  ;;  %v2658_v61 = vld [vmem:[%s3921_s29 + $0x190] sm:$0xff]  ;;  %v2649_v63 = vld [vmem:[%s3921_s29 + $0x148] sm:$0xff] }
  0x1e   :  { %600 = vmatpush.bf16.msra.mxu3 %v2635_v19  ;;  %v2657_v0 = vld [vmem:[%s3921_s29 + $0x188] sm:$0xff]  ;;  %v2640_v1 = vld [vmem:[%s3921_s29 + $0x100] sm:$0xff]  ;;  %v1937_v4 = vld [vmem:[%s3922_s23 + $0x10] sm:$0xf] }
  0x1f   :  { %559 = vmatpush.bf16.msra.mxu0 %v2610_v20  ;;  %v2648_v2 = vld [vmem:[%s3921_s29 + $0x140] sm:$0xff]  ;;  %v2606_v5 = vld [vmem:[%s3922_s23 + $0x28] sm:$0xf0]  ;;  %v2603_v6 = vld [vmem:[%s3922_s23 + $0x14] sm:$0xf] }
  0x20   :  { %573 = vmatpush.bf16.msra.mxu1 %v2618_v21  ;;  %v2656_v3 = vld [vmem:[%s3921_s29 + $0x180] sm:$0xff]  ;;  %v1939_v7 = vld [vmem:[%s3922_s23 + $0x2c] sm:$0xf0]  ;;  %v1945_v8 = vld [vmem:[%s3922_s23 + $0x18] sm:$0xf]  ;;  %v1938_v10 = vor.u32 %v2606_v5, %v1937_v4 }
  0x21   :  { %587 = vmatpush.bf16.msra.mxu2 %v2626_v22  ;;  %v2607_v9 = vld [vmem:[%s3922_s23 + $0x30] sm:$0xf0]  ;;  %v1942_v11 = vor.u32 %v2603_v6, %v1939_v7  ;;  %v2671_v13 = vld [vmem:[%s3901_s3 + $0x38] sm:$0xff]  ;;  %v2669_v15 = vld [vmem:[%s3901_s3 + $0x28] sm:$0xff] }
  0x22   :  { %601 = vmatpush.bf16.msra.mxu3 %v2634_v23  ;;  %v1946_v12 = vor.u32 %v2607_v9, %v1945_v8  ;;  %v2670_v14 = vld [vmem:[%s3901_s3 + $0x30] sm:$0xff]  ;;  %v2668_v16 = vld [vmem:[%s3901_s3 + $0x20] sm:$0xff]  ;;  %v2667_v17 = vld [vmem:[%s3901_s3 + $0x18] sm:$0xff] }
  0x23   :  { %560 = vmatpush.bf16.msra.mxu0 %v2609_v24  ;;  %v2666_v19 = vld [vmem:[%s3901_s3 + $0x10] sm:$0xff]  ;;  %v2665_v21 = vld [vmem:[%s3901_s3 + $0x8] sm:$0xff]  ;;  %v2664_v22 = vld [vmem:[%s3901_s3] sm:$0xff] }
  0x24   :  { %574 = vmatpush.bf16.msra.mxu1 %v2617_v25  ;;  %v2768_v23 = vld [vmem:[%s3923_s22] ss:$0 sm:$0xff]  ;;  %v2678_v32 = vld [vmem:[%s3902_s5 + $0x30] sm:$0xff]  ;;  %v2677_v37 = vld [vmem:[%s3902_s5 + $0x28] sm:$0xff] }
  0x25   :  { %588 = vmatpush.bf16.msra.mxu2 %v2625_v26  ;;  %v2684_v8 = vld [vmem:[%s3904_s7 + $0x20] sm:$0xff]  ;;  %v2683_v9 = vld [vmem:[%s3904_s7 + $0x18] sm:$0xff] }
  0x26   :  { %602 = vmatpush.bf16.msra.mxu3 %v2633_v28 }
  0x27   :  { %561 = vmatpush.bf16.msra.mxu0 %v2608_v27 }
  0x28   :  { %575 = vmatpush.bf16.msra.mxu1 %v2616_v29  ;;  %v2679_v29 = vld [vmem:[%s3902_s5 + $0x38] sm:$0xff] }
  0x29   :  { %589 = vmatpush.bf16.msra.mxu2 %v2624_v30 }
  0x2a   :  { %603 = vmatpush.bf16.msra.mxu3 %v2632_v40  ;;  %562 = vmatmul.bf16.vlgmr.msra.gmra.mxu0 %v1922_v41 }
  0x2b   :  { %610 = vmatpush.bf16.msrb.mxu0 %v2647_v31  ;;  %576 = vmatmul.bf16.vlgmr.msra.gmra.mxu1 %v1926_v45 }
  0x2c   :  { %624 = vmatpush.bf16.msrb.mxu1 %v2655_v38  ;;  %590 = vmatmul.bf16.vlgmr.msra.gmra.mxu2 %v1930_v42 }
  0x2d   :  { %638 = vmatpush.bf16.msrb.mxu2 %v2663_v39  ;;  %604 = vmatmul.bf16.vlgmr.msra.gmra.mxu3 %v1934_v49 }
  0x2e   :  { %723 = vmatpush.bf16.msrb.mxu3 %v2671_v13  ;;  %v2695_v13 = vld [vmem:[%s3906_s9 + $0x38] sm:$0xff] }
  0x2f   :  { %611 = vmatpush.bf16.msrb.mxu0 %v2646_v46 }
  0x30   :  { %625 = vmatpush.bf16.msrb.mxu1 %v2654_v47 }
  0x31   :  { %639 = vmatpush.bf16.msrb.mxu2 %v2662_v48 }
  0x32   :  { %724 = vmatpush.bf16.msrb.mxu3 %v2670_v14  ;;  %v2694_v14 = vld [vmem:[%s3906_s9 + $0x30] sm:$0xff] }
  0x33   :  { %612 = vmatpush.bf16.msrb.mxu0 %v2645_v50 }
  0x34   :  { %626 = vmatpush.bf16.msrb.mxu1 %v2653_v51 }
  0x35   :  { %640 = vmatpush.bf16.msrb.mxu2 %v2661_v52 }
  0x36   :  { %725 = vmatpush.bf16.msrb.mxu3 %v2669_v15  ;;  %v2693_v15 = vld [vmem:[%s3906_s9 + $0x28] sm:$0xff] }
  0x37   :  { %613 = vmatpush.bf16.msrb.mxu0 %v2644_v53 }
  0x38   :  { %627 = vmatpush.bf16.msrb.mxu1 %v2652_v54 }
  0x39   :  { %641 = vmatpush.bf16.msrb.mxu2 %v2660_v55 }
  0x3a   :  { %726 = vmatpush.bf16.msrb.mxu3 %v2668_v16  ;;  %v2692_v16 = vld [vmem:[%s3906_s9 + $0x20] sm:$0xff] }
  0x3b   :  { %614 = vmatpush.bf16.msrb.mxu0 %v2643_v56  ;;  %v2676_v56 = vld [vmem:[%s3902_s5 + $0x20] sm:$0xff] }
  0x3c   :  { %628 = vmatpush.bf16.msrb.mxu1 %v2651_v57  ;;  %v2675_v57 = vld [vmem:[%s3902_s5 + $0x18] sm:$0xff] }
  0x3d   :  { %642 = vmatpush.bf16.msrb.mxu2 %v2659_v58  ;;  %v2674_v58 = vld [vmem:[%s3902_s5 + $0x10] sm:$0xff] }
  0x3e   :  { %727 = vmatpush.bf16.msrb.mxu3 %v2667_v17 }
  0x3f   :  { %615 = vmatpush.bf16.msrb.mxu0 %v2642_v59  ;;  %v2673_v59 = vld [vmem:[%s3902_s5 + $0x8] sm:$0xff] }
  0x40   :  { %629 = vmatpush.bf16.msrb.mxu1 %v2650_v60  ;;  %v2672_v60 = vld [vmem:[%s3902_s5] sm:$0xff] }
  0x41   :  { %643 = vmatpush.bf16.msrb.mxu2 %v2658_v61  ;;  %v2687_v61 = vld [vmem:[%s3904_s7 + $0x38] sm:$0xff] }
  0x42   :  { %728 = vmatpush.bf16.msrb.mxu3 %v2666_v19  ;;  %v2691_v19 = vld [vmem:[%s3906_s9 + $0x18] sm:$0xff] }
  0x43   :  { %616 = vmatpush.bf16.msrb.mxu0 %v2641_v62  ;;  %v2686_v62 = vld [vmem:[%s3904_s7 + $0x30] sm:$0xff] }
  0x44   :  { %630 = vmatpush.bf16.msrb.mxu1 %v2649_v63  ;;  %v2685_v63 = vld [vmem:[%s3904_s7 + $0x28] sm:$0xff] }
  0x45   :  { %644 = vmatpush.bf16.msrb.mxu2 %v2657_v0 }
  0x46   :  { %729 = vmatpush.bf16.msrb.mxu3 %v2665_v21 }
  0x47   :  { %617 = vmatpush.bf16.msrb.mxu0 %v2640_v1  ;;  %v2769_v1 = vld [vmem:[%s3900_s4] ss:$0 sm:$0xff] }
  0x48   :  { %631 = vmatpush.bf16.msrb.mxu1 %v2648_v2 }
  0x49   :  { %645 = vmatpush.bf16.msrb.mxu2 %v2656_v3 }
  0x4a   :  { %618 = vmatmul.bf16.vlgmr.msrb.gmra.mxu0 %v1938_v10  ;;  %730 = vmatpush.bf16.msrb.mxu3 %v2664_v22  ;;  %v2682_v10 = vld [vmem:[%s3904_s7 + $0x10] sm:$0xff] }
  0x4b   :  { %632 = vmatmul.bf16.vlgmr.msrb.gmra.mxu1 %v1942_v11  ;;  %808 = vmatpush.bf16.msra.mxu0 %v2679_v29  ;;  %v2681_v11 = vld [vmem:[%s3904_s7 + $0x8] sm:$0xff]  ;;  %v2703_v29 = vld [vmem:[%s3908_s11 + $0x38] sm:$0xff] }
  0x4c   :  { %646 = vmatmul.bf16.vlgmr.msrb.gmra.mxu2 %v1946_v12  ;;  %893 = vmatpush.bf16.msra.mxu1 %v2687_v61  ;;  %v2680_v12 = vld [vmem:[%s3904_s7] sm:$0xff]  ;;  %v2761_v61 = vld [vmem:[%s3913_s15 + $0x18c] sm:$0xf] }
  0x4d   :  { %978 = vmatpush.bf16.msra.mxu2 %v2695_v13  ;;  %v2505_v13 = vld [vmem:[%s3913_s15 + $0x118] sm:$0xf] }
  0x4e   :  { %1063 = vmatpush.bf16.msra.mxu3 %v2703_v29  ;;  %v2744_v29 = vld [vmem:[%s3913_s15 + $0x100] sm:$0xf0] }
  0x4f   :  { %809 = vmatpush.bf16.msra.mxu0 %v2678_v32  ;;  %v2771_v32 = vld [vmem:[%s3905_s8] ss:$0 sm:$0xff] }
  0x50   :  { %894 = vmatpush.bf16.msra.mxu1 %v2686_v62 }
  0x51   :  { %979 = vmatpush.bf16.msra.mxu2 %v2694_v14  ;;  %v2750_v14 = vld [vmem:[%s3913_s15 + $0x130] sm:$0xf0] }
  0x53   :  { %810 = vmatpush.bf16.msra.mxu0 %v2677_v37 }
  0x54   :  { %895 = vmatpush.bf16.msra.mxu1 %v2685_v63  ;;  %v2563_v63 = vld [vmem:[%s3913_s15 + $0x1a4] sm:$0xf0] }
  0x55   :  { %980 = vmatpush.bf16.msra.mxu2 %v2693_v15  ;;  %v2747_v15 = vld [vmem:[%s3913_s15 + $0x11c] sm:$0xf] }
  0x57   :  { %811 = vmatpush.bf16.msra.mxu0 %v2676_v56  ;;  %v2706_v56 = vld [vmem:[%s3911_s13 + $0x10] sm:$0xff] }
  0x58   :  { %896 = vmatpush.bf16.msra.mxu1 %v2684_v8  ;;  %v2535_v8 = vld [vmem:[%s3913_s15 + $0x16c] sm:$0xf0] }
  0x59   :  { %981 = vmatpush.bf16.msra.mxu2 %v2692_v16  ;;  %v2507_v16 = vld [vmem:[%s3913_s15 + $0x134] sm:$0xf0] }
  0x5b   :  { %812 = vmatpush.bf16.msra.mxu0 %v2675_v57  ;;  %v2705_v57 = vld [vmem:[%s3911_s13 + $0x8] sm:$0xff] }
  0x5c   :  { %897 = vmatpush.bf16.msra.mxu1 %v2683_v9  ;;  %v2541_v9 = vld [vmem:[%s3913_s15 + $0x158] sm:$0xf] }
  0x5d   :  { %982 = vmatpush.bf16.msra.mxu2 %v2691_v19  ;;  %v2506_v19 = vor.u32 %v2750_v14, %v2505_v13  ;;  %v2365_v14 = vld [vmem:[%s3913_s15] sm:$0xf] }
  0x5f   :  { %813 = vmatpush.bf16.msra.mxu0 %v2674_v58  ;;  %v2704_v58 = vld [vmem:[%s3911_s13] sm:$0xff] }
  0x60   :  { %898 = vmatpush.bf16.msra.mxu1 %v2682_v10  ;;  %v2758_v10 = vld [vmem:[%s3913_s15 + $0x170] sm:$0xf0] }
  0x63   :  { %814 = vmatpush.bf16.msra.mxu0 %v2673_v59  ;;  %v2561_v59 = vld [vmem:[%s3913_s15 + $0x188] sm:$0xf] }
  0x64   :  { %899 = vmatpush.bf16.msra.mxu1 %v2681_v11 }
  0x67   :  { %815 = vmatpush.bf16.msra.mxu0 %v2672_v60  ;;  %v2764_v60 = vld [vmem:[%s3913_s15 + $0x1a0] sm:$0xf0] }
  0x68   :  { %900 = vmatpush.bf16.msra.mxu1 %v2680_v12  ;;  %v2562_v62 = vor.u32 %v2764_v60, %v2561_v59  ;;  %v2542_v12 = vor.u32 %v2758_v10, %v2541_v9 }
  0x6c   :  { %1533 = vmatpush.bf16.msrb.mxu1 %v2562_v62 }
  0xa7   :  { %v563_v18 = vpop.f32.mrf.mxu0 }
  0xa8   :  { %v577_v20 = vpop.f32.mrf.mxu1  ;;  %v564_v26 = vadd.f32 %v2768_v23, %v563_v18  ;;  %v2770_v18 = vld [vmem:[%s3903_s6] ss:$0 sm:$0xff] }
  0xaa   :  { %v578_v31 = vadd.f32 %v577_v20, %v564_v26  ;;  %v2690_v26 = vld [vmem:[%s3906_s9 + $0x10] sm:$0xff] }
  0xab   :  { %983 = vmatpush.bf16.msra.mxu2 %v2690_v26  ;;  %v2571_v26 = vld [vmem:[%s3913_s15 + $0x1ac] sm:$0xf0] }
  0xaf   :  { %v591_v24 = vpop.f32.mrf.mxu2  ;;  %v565_v25 = vpop.f32.mrf.mxu0 }
  0xb0   :  { %v605_v27 = vpop.f32.mrf.mxu3  ;;  %v579_v28 = vpop.f32.mrf.mxu1  ;;  %v566_v30 = vadd.f32 %v2768_v23, %v565_v25  ;;  %v592_v36 = vadd.f32 %v591_v24, %v578_v31  ;;  %v2701_v31 = vld [vmem:[%s3908_s11 + $0x28] sm:$0xff] }
  0xb2   :  { %v580_v34 = vadd.f32 %v579_v28, %v566_v30  ;;  %v606_v40 = vadd.f32 %v605_v27, %v592_v36  ;;  %v2689_v27 = vld [vmem:[%s3906_s9 + $0x8] sm:$0xff]  ;;  %v2688_v28 = vld [vmem:[%s3906_s9] sm:$0xff]  ;;  %v2702_v30 = vld [vmem:[%s3908_s11 + $0x30] sm:$0xff] }
  0xb3   :  { %984 = vmatpush.bf16.msra.mxu2 %v2689_v27  ;;  %1064 = vmatpush.bf16.msra.mxu3 %v2702_v30  ;;  %v2479_v27 = vld [vmem:[%s3913_s15 + $0xfc] sm:$0xf0] }
  0xb7   :  { %v593_v33 = vpop.f32.mrf.mxu2  ;;  %985 = vmatpush.bf16.msra.mxu2 %v2688_v28  ;;  %1065 = vmatpush.bf16.msra.mxu3 %v2701_v31  ;;  %v2485_v28 = vld [vmem:[%s3913_s15 + $0xe8] sm:$0xf]  ;;  %v2755_v31 = vld [vmem:[%s3913_s15 + $0x15c] sm:$0xf] }
  0xb8   :  { %v594_v39 = vadd.f32 %v593_v33, %v580_v34  ;;  %v607_v41 = vpop.f32.mrf.mxu3 }
  0xba   :  { %v608_v44 = vadd.f32 %v607_v41, %v594_v39  ;;  %v2699_v39 = vld [vmem:[%s3908_s11 + $0x18] sm:$0xff]  ;;  %v2697_v41 = vld [vmem:[%s3908_s11 + $0x8] sm:$0xff] }
  0xc7   :  { %v619_v35 = vpop.f32.mrf.mxu0 }
  0xc8   :  { %v633_v38 = vpop.f32.mrf.mxu1  ;;  %v620_v42 = vadd.f32 %v619_v35, %v606_v40  ;;  %v2698_v40 = vld [vmem:[%s3908_s11 + $0x10] sm:$0xff] }
  0xca   :  { %v634_v47 = vadd.f32 %v633_v38, %v620_v42  ;;  %v2700_v38 = vld [vmem:[%s3908_s11 + $0x20] sm:$0xff] }
  0xcb   :  { %1066 = vmatpush.bf16.msra.mxu3 %v2700_v38  ;;  %v2696_v42 = vld [vmem:[%s3908_s11] sm:$0xff]  ;;  %v2486_v38 = vor.u32 %v2744_v29, %v2485_v28  ;;  %v2763_v28 = vld [vmem:[%s3913_s15 + $0x19c] sm:$0xf]  ;;  %v2579_v29 = vld [vmem:[%s3913_s15 + $0x1b4] sm:$0xf0] }
  0xcf   :  { %v647_v43 = vpop.f32.mrf.mxu2  ;;  %v621_v45 = vpop.f32.mrf.mxu0  ;;  %1067 = vmatpush.bf16.msra.mxu3 %v2699_v39  ;;  %v2733_v39 = vld [vmem:[%s3913_s15 + $0xac] sm:$0xf] }
  0xd0   :  { %v622_v46 = vadd.f32 %v621_v45, %v608_v44  ;;  %v648_v48 = vadd.f32 %v647_v43, %v634_v47  ;;  %v635_v49 = vpop.f32.mrf.mxu1  ;;  %v2711_v43 = vld [vmem:[%s3911_s13 + $0x38] sm:$0xff]  ;;  %v2710_v44 = vld [vmem:[%s3911_s13 + $0x30] sm:$0xff]  ;;  %v2709_v45 = vld [vmem:[%s3911_s13 + $0x28] sm:$0xff] }
  0xd1   :  { %1148 = vmatpush.bf16.msrb.mxu0 %v2711_v43  ;;  %v2772_v47 = vld [vmem:[%s3907_s10] ss:$0 sm:$0xff]  ;;  %v2737_v43 = vld [vmem:[%s3913_s15 + $0xc8] sm:$0xf0] }
  0xd2   :  { %v636_v50 = vadd.f32 %v635_v49, %v622_v46  ;;  %2775 = vtanh.f32 %v648_v48 }
  0xd3   :  { %1068 = vmatpush.bf16.msra.mxu3 %v2698_v40  ;;  %v2451_v40 = vld [vmem:[%s3913_s15 + $0xc4] sm:$0xf0] }
  0xd5   :  { %1149 = vmatpush.bf16.msrb.mxu0 %v2710_v44  ;;  %v2748_v44 = vld [vmem:[%s3913_s15 + $0x124] sm:$0xf] }
  0xd7   :  { %v649_v51 = vpop.f32.mrf.mxu2  ;;  %1069 = vmatpush.bf16.msra.mxu3 %v2697_v41  ;;  %v2457_v41 = vld [vmem:[%s3913_s15 + $0xb0] sm:$0xf] }
  0xd8   :  { %v650_v52 = vadd.f32 %v649_v51, %v636_v50  ;;  %v2776_v53 = vpop.eup %2775 }
  0xd9   :  { %1150 = vmatpush.bf16.msrb.mxu0 %v2709_v45  ;;  %v2515_v45 = vld [vmem:[%s3913_s15 + $0x13c] sm:$0xf0] }
  0xda   :  { %2777 = vtanh.f32 %v650_v52 }
  0xdb   :  { %1070 = vmatpush.bf16.msra.mxu3 %v2696_v42 }
  0xe0   :  { %v2778_v54 = vpop.eup %2777 }
  0xe1   :  { %v654_v55 = vpack.c.bf16 %v2778_v54, %v2776_v53  ;;  %v2708_v54 = vld [vmem:[%s3911_s13 + $0x20] sm:$0xff] }
  0xe2   :  { %1151 = vmatpush.bf16.msrb.mxu0 %v2708_v54  ;;  %v2423_v54 = vld [vmem:[%s3913_s15 + $0x8c] sm:$0xf0] }
  0xe3   :  { %731 = vmatmul.bf16.vlgmr.msrb.gmra.mxu3 %v654_v55  ;;  %v2707_v55 = vld [vmem:[%s3911_s13 + $0x18] sm:$0xff] }
  0xe6   :  { %1152 = vmatpush.bf16.msrb.mxu0 %v2707_v55  ;;  %v2429_v55 = vld [vmem:[%s3913_s15 + $0x78] sm:$0xf] }
  0xea   :  { %1153 = vmatpush.bf16.msrb.mxu0 %v2706_v56  ;;  %v2730_v56 = vld [vmem:[%s3913_s15 + $0x90] sm:$0xf0] }
  0xee   :  { %1154 = vmatpush.bf16.msrb.mxu0 %v2705_v57 }
  0xf2   :  { %1155 = vmatpush.bf16.msrb.mxu0 %v2704_v58 }
 0x166   :  { %v732_v0 = vpop.f32.mrf.mxu3 }
 0x167   :  { %v733_v2 = vadd.f32 %v2769_v1, %v732_v0  ;;  %v2569_v0 = vld [vmem:[%s3913_s15 + $0x190] sm:$0xf] }
 0x169   :  { %2779 = vtanh.f32 %v733_v2  ;;  %v2566_v2 = vor.u32 %v2761_v61, %v2563_v63  ;;  %v2430_v61 = vor.u32 %v2730_v56, %v2429_v55  ;;  %v2529_v56 = vld [vmem:[%s3913_s15 + $0x130] sm:$0xf] }
 0x16b   :  { %1547 = vmatpush.bf16.msrb.mxu2 %v2566_v2  ;;  %v2393_v2 = vld [vmem:[%s3913_s15 + $0x38] sm:$0xf] }
 0x16e   :  { %v734_v3 = vpop.f32.mrf.mxu3 }
 0x16f   :  { %v735_v4 = vadd.f32 %v2769_v1, %v734_v3  ;;  %v2780_v5 = vpop.eup %2779  ;;  %v2765_v1 = vld [vmem:[%s3913_s15 + $0x1a8] sm:$0xf0] }
 0x170   :  { %v2570_v3 = vor.u32 %v2765_v1, %v2569_v0 }
 0x171   :  { %2781 = vtanh.f32 %v735_v4  ;;  %v2533_v4 = vld [vmem:[%s3913_s15 + $0x150] sm:$0xf] }
 0x172   :  { %1561 = vmatpush.bf16.msrb.mxu3 %v2570_v3  ;;  %v2722_v3 = vld [vmem:[%s3913_s15 + $0x50] sm:$0xf0] }
 0x176   :  { %1562 = vmatpush.bf16.msrb.mxu3 %v2542_v12  ;;  %v2487_v12 = vld [vmem:[%s3913_s15 + $0x104] sm:$0xf0] }
 0x177   :  { %v2782_v6 = vpop.eup %2781 }
 0x178   :  { %v739_v7 = vpack.c.bf16 %v2782_v6, %v2780_v5  ;;  %v2757_v5 = vld [vmem:[%s3913_s15 + $0x168] sm:$0xf0]  ;;  %v2754_v6 = vld [vmem:[%s3913_s15 + $0x154] sm:$0xf] }
 0x179   :  { %v2538_v11 = vor.u32 %v2754_v6, %v2535_v8  ;;  %v2395_v6 = vld [vmem:[%s3913_s15 + $0x54] sm:$0xf0]  ;;  %v2723_v8 = vld [vmem:[%s3913_s15 + $0x58] sm:$0xf0] }
 0x17a   :  { %816 = vmatmul.bf16.vlgmr.msra.gmra.mxu0 %v739_v7  ;;  %v2534_v7 = vor.u32 %v2757_v5, %v2533_v4  ;;  %v2719_v4 = vld [vmem:[%s3913_s15 + $0x3c] sm:$0xf]  ;;  %v2394_v5 = vor.u32 %v2722_v3, %v2393_v2 }
 0x17b   :  { %1548 = vmatpush.bf16.msrb.mxu2 %v2538_v11  ;;  %v2398_v9 = vor.u32 %v2719_v4, %v2395_v6  ;;  %v2741_v11 = vld [vmem:[%s3913_s15 + $0xec] sm:$0xf]  ;;  %v2501_v4 = vld [vmem:[%s3913_s15 + $0xf8] sm:$0xf] }
 0x17c   :  { %1534 = vmatpush.bf16.msrb.mxu1 %v2534_v7  ;;  %v2401_v7 = vld [vmem:[%s3913_s15 + $0x40] sm:$0xf]  ;;  %v2490_v13 = vor.u32 %v2741_v11, %v2487_v12  ;;  %v2467_v11 = vld [vmem:[%s3913_s15 + $0xd4] sm:$0xf0] }
 0x17d   :  { %v2402_v10 = vor.u32 %v2723_v8, %v2401_v7  ;;  %v2465_v7 = vld [vmem:[%s3913_s15 + $0xb8] sm:$0xf]  ;;  %v2738_v8 = vld [vmem:[%s3913_s15 + $0xd0] sm:$0xf0]  ;;  %v2473_v12 = vld [vmem:[%s3913_s15 + $0xc0] sm:$0xf] }
 0x180   :  { %1535 = vmatpush.bf16.msrb.mxu1 %v2506_v19  ;;  %v2373_v19 = vld [vmem:[%s3913_s15 + $0x8] sm:$0xf] }
 0x1f7   :  { %v817_v17 = vpop.f32.mrf.mxu0 }
 0x1f8   :  { %v818_v20 = vadd.f32 %v2770_v18, %v817_v17  ;;  %v2513_v17 = vld [vmem:[%s3913_s15 + $0x120] sm:$0xf] }
 0x1fa   :  { %2783 = vtanh.f32 %v818_v20  ;;  %v2477_v20 = vld [vmem:[%s3913_s15 + $0xe0] sm:$0xf] }
 0x1ff   :  { %v819_v21 = vpop.f32.mrf.mxu0 }
 0x200   :  { %v820_v22 = vadd.f32 %v2770_v18, %v819_v21  ;;  %v2784_v23 = vpop.eup %2783  ;;  %v2751_v18 = vld [vmem:[%s3913_s15 + $0x138] sm:$0xf0] }
 0x201   :  { %v2743_v21 = vld [vmem:[%s3913_s15 + $0xf8] sm:$0xf0] }
 0x202   :  { %2785 = vtanh.f32 %v820_v22  ;;  %v2510_v22 = vor.u32 %v2747_v15, %v2507_v16  ;;  %v2715_v15 = vld [vmem:[%s3913_s15 + $0x18] sm:$0xf0]  ;;  %v2712_v16 = vld [vmem:[%s3913_s15 + $0x4] sm:$0xf] }
 0x204   :  { %1549 = vmatpush.bf16.msrb.mxu2 %v2510_v22 }
 0x208   :  { %v2786_v24 = vpop.eup %2785 }
 0x209   :  { %v824_v25 = vpack.c.bf16 %v2786_v24, %v2784_v23  ;;  %v2514_v23 = vor.u32 %v2751_v18, %v2513_v17  ;;  %v2740_v24 = vld [vmem:[%s3913_s15 + $0xe4] sm:$0xf]  ;;  %v2366_v17 = vor.u32 %v2715_v15, %v2365_v14  ;;  %v2367_v18 = vld [vmem:[%s3913_s15 + $0x1c] sm:$0xf0] }
 0x20b   :  { %901 = vmatmul.bf16.vlgmr.msra.gmra.mxu1 %v824_v25  ;;  %v2762_v25 = vld [vmem:[%s3913_s15 + $0x194] sm:$0xf]  ;;  %1563 = vmatpush.bf16.msrb.mxu3 %v2514_v23 }
 0x20c   :  { %v2574_v30 = vor.u32 %v2762_v25, %v2571_v26  ;;  %v2734_v23 = vld [vmem:[%s3913_s15 + $0xb4] sm:$0xf]  ;;  %v2577_v25 = vld [vmem:[%s3913_s15 + $0x198] sm:$0xf] }
 0x20e   :  { %1575 = vmatpush.bf16.msra.mxu0 %v2574_v30 }
 0x20f   :  { %1564 = vmatpush.bf16.msrb.mxu3 %v2486_v38 }
 0x288   :  { %v902_v33 = vpop.f32.mrf.mxu1 }
 0x289   :  { %v903_v34 = vadd.f32 %v2771_v32, %v902_v33  ;;  %v2449_v33 = vld [vmem:[%s3913_s15 + $0xa8] sm:$0xf] }
 0x28b   :  { %907 = vst [vmem:[%s3909_s17] sm:$0xff] %v903_v34 }
 0x290   :  { %v904_v35 = vpop.f32.mrf.mxu1 }
 0x291   :  { %v905_v36 = vadd.f32 %v2771_v32, %v904_v35  ;;  %v2478_v32 = vor.u32 %v2743_v21, %v2477_v20  ;;  %v2543_v35 = vld [vmem:[%s3913_s15 + $0x174] sm:$0xf0]  ;;  %v2716_v20 = vld [vmem:[%s3913_s15 + $0x20] sm:$0xf0]  ;;  %v2370_v21 = vor.u32 %v2712_v16, %v2367_v18  ;;  %v2437_v16 = vld [vmem:[%s3913_s15 + $0x80] sm:$0xf] }
 0x292   :  { %v2546_v42 = vor.u32 %v2755_v31, %v2543_v35  ;;  %v2374_v22 = vor.u32 %v2716_v20, %v2373_v19  ;;  %v2582_v31 = vor.u32 %v2763_v28, %v2579_v29  ;;  %v2727_v35 = vld [vmem:[%s3913_s15 + $0x7c] sm:$0xf]  ;;  %v2728_v18 = vld [vmem:[%s3913_s15 + $0x84] sm:$0xf]  ;;  %v2439_v19 = vld [vmem:[%s3913_s15 + $0x9c] sm:$0xf0] }
 0x293   :  { %908 = vst [vmem:[%s3909_s17 + $0x8] sm:$0xff] %v905_v36  ;;  %v909_v37 = vpack.c.bf16 %v905_v36, %v903_v34  ;;  %v2736_v34 = vld [vmem:[%s3913_s15 + $0xc0] sm:$0xf0]  ;;  %1536 = vmatpush.bf16.msrb.mxu1 %v2478_v32  ;;  %v2585_v32 = vld [vmem:[%s3913_s15 + $0x1a0] sm:$0xf] }
 0x294   :  { %1576 = vmatpush.bf16.msra.mxu0 %v2546_v42  ;;  %v2445_v20 = vld [vmem:[%s3913_s15 + $0x88] sm:$0xf]  ;;  %v2417_v29 = vld [vmem:[%s3913_s15 + $0x50] sm:$0xf] }
 0x295   :  { %986 = vmatmul.bf16.vlgmr.msra.gmra.mxu2 %v909_v37  ;;  %v2482_v37 = vor.u32 %v2740_v24, %v2479_v27  ;;  %v2459_v24 = vld [vmem:[%s3913_s15 + $0xcc] sm:$0xf0]  ;;  %v2766_v27 = vld [vmem:[%s3913_s15 + $0x1b0] sm:$0xf0]  ;;  %v2411_v28 = vld [vmem:[%s3913_s15 + $0x64] sm:$0xf0] }
 0x296   :  { %v2462_v26 = vor.u32 %v2734_v23, %v2459_v24  ;;  %v2578_v30 = vor.u32 %v2766_v27, %v2577_v25  ;;  %v2442_v23 = vor.u32 %v2728_v18, %v2439_v19  ;;  %v2409_v24 = vld [vmem:[%s3913_s15 + $0x48] sm:$0xf]  ;;  %v2721_v27 = vld [vmem:[%s3913_s15 + $0x4c] sm:$0xf] }
 0x297   :  { %1550 = vmatpush.bf16.msrb.mxu2 %v2482_v37  ;;  %v2549_v37 = vld [vmem:[%s3913_s15 + $0x160] sm:$0xf] }
 0x318   :  { %v987_v46 = vpop.f32.mrf.mxu2 }
 0x319   :  { %v988_v48 = vadd.f32 %v2772_v47, %v987_v46  ;;  %v2773_v46 = vld [vmem:[%s3910_s12] ss:$0 sm:$0xff] }
 0x31b   :  { %2787 = vtanh.f32 %v988_v48  ;;  %v2518_v48 = vor.u32 %v2748_v44, %v2515_v45  ;;  %v2557_v44 = vld [vmem:[%s3913_s15 + $0x168] sm:$0xf]  ;;  %v2760_v45 = vld [vmem:[%s3913_s15 + $0x180] sm:$0xf0] }
 0x31d   :  { %1577 = vmatpush.bf16.msra.mxu0 %v2518_v48  ;;  %v2403_v48 = vld [vmem:[%s3913_s15 + $0x5c] sm:$0xf0] }
 0x320   :  { %v989_v49 = vpop.f32.mrf.mxu2 }
 0x321   :  { %v990_v50 = vadd.f32 %v2772_v47, %v989_v49  ;;  %v2788_v51 = vpop.eup %2787  ;;  %v2450_v47 = vor.u32 %v2736_v34, %v2449_v33  ;;  %v2454_v49 = vor.u32 %v2733_v39, %v2451_v40  ;;  %1578 = vmatpush.bf16.msra.mxu0 %v2490_v13  ;;  %v2767_v33 = vld [vmem:[%s3913_s15 + $0x1b8] sm:$0xf0]  ;;  %v2756_v40 = vld [vmem:[%s3913_s15 + $0x164] sm:$0xf] }
 0x322   :  { %v2586_v34 = vor.u32 %v2767_v33, %v2585_v32  ;;  %v2759_v39 = vld [vmem:[%s3913_s15 + $0x178] sm:$0xf0]  ;;  %v2414_v32 = vor.u32 %v2721_v27, %v2411_v28  ;;  %v2381_v33 = vld [vmem:[%s3913_s15 + $0x10] sm:$0xf] }
 0x323   :  { %2789 = vtanh.f32 %v990_v50  ;;  %v2458_v50 = vor.u32 %v2737_v43, %v2457_v41  ;;  %1537 = vmatpush.bf16.msrb.mxu1 %v2450_v47  ;;  %1551 = vmatpush.bf16.msrb.mxu2 %v2454_v49  ;;  %v2551_v41 = vld [vmem:[%s3913_s15 + $0x17c] sm:$0xf0]  ;;  %v2550_v42 = vor.u32 %v2759_v39, %v2549_v37  ;;  %v2720_v47 = vld [vmem:[%s3913_s15 + $0x44] sm:$0xf]  ;;  %v2521_v49 = vld [vmem:[%s3913_s15 + $0x128] sm:$0xf] }
 0x324   :  { %v2554_v43 = vor.u32 %v2756_v40, %v2551_v41  ;;  %v2739_v13 = vld [vmem:[%s3913_s15 + $0xd8] sm:$0xf0]  ;;  %v2383_v37 = vld [vmem:[%s3913_s15 + $0x2c] sm:$0xf0]  ;;  %v2718_v39 = vld [vmem:[%s3913_s15 + $0x30] sm:$0xf0] }
 0x325   :  { %1565 = vmatpush.bf16.msrb.mxu3 %v2458_v50  ;;  %1579 = vmatpush.bf16.msra.mxu0 %v2462_v26  ;;  %v2406_v50 = vor.u32 %v2720_v47, %v2403_v48  ;;  %v2474_v15 = vor.u32 %v2739_v13, %v2473_v12  ;;  %v2724_v26 = vld [vmem:[%s3913_s15 + $0x60] sm:$0xf0] }
 0x329   :  { %v2790_v52 = vpop.eup %2789  ;;  %1566 = vmatpush.bf16.msrb.mxu3 %v2430_v61  ;;  %v2493_v61 = vld [vmem:[%s3913_s15 + $0xf0] sm:$0xf] }
 0x32a   :  { %v994_v53 = vpack.c.bf16 %v2790_v52, %v2788_v51  ;;  %v2421_v51 = vld [vmem:[%s3913_s15 + $0x70] sm:$0xf]  ;;  %v2729_v52 = vld [vmem:[%s3913_s15 + $0x88] sm:$0xf0] }
 0x32b   :  { %v2422_v58 = vor.u32 %v2729_v52, %v2421_v51  ;;  %v2752_v51 = vld [vmem:[%s3913_s15 + $0x140] sm:$0xf0]  ;;  %v2749_v52 = vld [vmem:[%s3913_s15 + $0x12c] sm:$0xf] }
 0x32c   :  { %1071 = vmatmul.bf16.vlgmr.msra.gmra.mxu3 %v994_v53  ;;  %v2726_v53 = vld [vmem:[%s3913_s15 + $0x74] sm:$0xf] }
 0x32d   :  { %v2426_v60 = vor.u32 %v2726_v53, %v2423_v54  ;;  %1538 = vmatpush.bf16.msrb.mxu1 %v2422_v58  ;;  %1567 = vmatpush.bf16.msrb.mxu3 %v2402_v10  ;;  %v2523_v53 = vld [vmem:[%s3913_s15 + $0x144] sm:$0xf0]  ;;  %v2522_v54 = vor.u32 %v2752_v51, %v2521_v49  ;;  %v2466_v10 = vor.u32 %v2738_v8, %v2465_v7  ;;  %v3670_v51 = vld [vmem:[%s3914_s16] sm:$0xff] }
 0x32e   :  { %v2526_v55 = vor.u32 %v2749_v52, %v2523_v53  ;;  %v1231_v52 = vperm.slane %v3670_v51, 0  ;;  %v1234_v53 = vperm.slane %v3670_v51, 3 }
 0x32f   :  { %1552 = vmatpush.bf16.msrb.mxu2 %v2426_v60  ;;  %v2375_v60 = vld [vmem:[%s3913_s15 + $0x24] sm:$0xf0] }
 0x331   :  { %1539 = vmatpush.bf16.msrb.mxu1 %v2394_v5  ;;  %1568 = vmatpush.bf16.msrb.mxu3 %v2374_v22  ;;  %v2746_v5 = vld [vmem:[%s3913_s15 + $0x110] sm:$0xf0] }
 0x332   :  { %v2502_v6 = vor.u32 %v2746_v5, %v2501_v4 }
 0x333   :  { %1553 = vmatpush.bf16.msrb.mxu2 %v2398_v9  ;;  %v2735_v9 = vld [vmem:[%s3913_s15 + $0xbc] sm:$0xf] }
 0x334   :  { %v2470_v14 = vor.u32 %v2735_v9, %v2467_v11 }
 0x335   :  { %1540 = vmatpush.bf16.msrb.mxu1 %v2366_v17  ;;  %1617 = vmatpush.bf16.msra.mxu3 %v2586_v34  ;;  %v2731_v17 = vld [vmem:[%s3913_s15 + $0x98] sm:$0xf0] }
 0x336   :  { %v2438_v22 = vor.u32 %v2731_v17, %v2437_v16  ;;  %v1235_v16 = vperm.slane %v3670_v51, 4 }
 0x337   :  { %1554 = vmatpush.bf16.msrb.mxu2 %v2370_v21  ;;  %v2732_v21 = vld [vmem:[%s3913_s15 + $0xa0] sm:$0xf0] }
 0x338   :  { %v2446_v25 = vor.u32 %v2732_v21, %v2445_v20 }
 0x339   :  { %1589 = vmatpush.bf16.msra.mxu1 %v2578_v30  ;;  %v2725_v30 = vld [vmem:[%s3913_s15 + $0x68] sm:$0xf0] }
 0x33a   :  { %v2418_v34 = vor.u32 %v2725_v30, %v2417_v29  ;;  %v1236_v30 = vperm.slane %v3670_v51, 5 }
 0x33b   :  { %1603 = vmatpush.bf16.msra.mxu2 %v2582_v31  ;;  %v2410_v31 = vor.u32 %v2724_v26, %v2409_v24 }
 0x33d   :  { %1590 = vmatpush.bf16.msra.mxu1 %v2550_v42 }
 0x33f   :  { %1604 = vmatpush.bf16.msra.mxu2 %v2554_v43 }
 0x341   :  { %1591 = vmatpush.bf16.msra.mxu1 %v2522_v54 }
 0x343   :  { %1605 = vmatpush.bf16.msra.mxu2 %v2526_v55 }
 0x3af   :  { %v1072_v36 = vpop.f32.mrf.mxu3 }
 0x3b0   :  { %v1073_v57 = vadd.f32 %v2773_v46, %v1072_v36  ;;  %v2431_v36 = vld [vmem:[%s3913_s15 + $0x94] sm:$0xf0] }
 0x3b1   :  { %v2434_v38 = vor.u32 %v2727_v35, %v2431_v36  ;;  %v2717_v35 = vld [vmem:[%s3913_s15 + $0x28] sm:$0xf0]  ;;  %v2714_v36 = vld [vmem:[%s3913_s15 + $0x14] sm:$0xf] }
 0x3b2   :  { %2791 = vtanh.f32 %v1073_v57  ;;  %v2753_v57 = vld [vmem:[%s3913_s15 + $0x148] sm:$0xf0]  ;;  %v2382_v40 = vor.u32 %v2717_v35, %v2381_v33  ;;  %v2386_v41 = vor.u32 %v2714_v36, %v2383_v37 }
 0x3b3   :  { %1580 = vmatpush.bf16.msra.mxu0 %v2434_v38  ;;  %v2530_v58 = vor.u32 %v2753_v57, %v2529_v56  ;;  %v2389_v38 = vld [vmem:[%s3913_s15 + $0x18] sm:$0xf] }
 0x3b4   :  { %v2390_v43 = vor.u32 %v2718_v39, %v2389_v38 }
 0x3b7   :  { %v1074_v59 = vpop.f32.mrf.mxu3  ;;  %1581 = vmatpush.bf16.msra.mxu0 %v2406_v50 }
 0x3b8   :  { %v1075_v62 = vadd.f32 %v2773_v46, %v1074_v59  ;;  %v2792_v63 = vpop.eup %2791  ;;  %v2558_v46 = vor.u32 %v2760_v45, %v2557_v44  ;;  %v2713_v59 = vld [vmem:[%s3913_s15 + $0xc] sm:$0xf]  ;;  %v2774_v44 = vld [vmem:[%s3912_s14] ss:$0 sm:$0xff] }
 0x3ba   :  { %2793 = vtanh.f32 %v1075_v62  ;;  %1618 = vmatpush.bf16.msra.mxu3 %v2558_v46  ;;  %v2378_v62 = vor.u32 %v2713_v59, %v2375_v60  ;;  %v1232_v59 = vperm.slane %v3670_v51, 1 }
 0x3bc   :  { %1582 = vmatpush.bf16.msra.mxu0 %v2378_v62 }
 0x3be   :  { %1619 = vmatpush.bf16.msra.mxu3 %v2530_v58 }
 0x3c0   :  { %v2794_v0 = vpop.eup %2793 }
 0x3c1   :  { %v1079_v1 = vpack.c.bf16 %v2794_v0, %v2792_v63  ;;  %v2745_v63 = vld [vmem:[%s3913_s15 + $0x108] sm:$0xf0]  ;;  %v2742_v0 = vld [vmem:[%s3913_s15 + $0xf4] sm:$0xf] }
 0x3c2   :  { %v2494_v2 = vor.u32 %v2745_v63, %v2493_v61  ;;  %1620 = vmatpush.bf16.msra.mxu3 %v2502_v6  ;;  %v1233_v61 = vperm.slane %v3670_v51, 2 }
 0x3c3   :  { %1156 = vmatmul.bf16.vlgmr.msrb.gmra.mxu0 %v1079_v1  ;;  %v2495_v1 = vld [vmem:[%s3913_s15 + $0x10c] sm:$0xf0] }
 0x3c4   :  { %v2498_v3 = vor.u32 %v2742_v0, %v2495_v1  ;;  %1592 = vmatpush.bf16.msra.mxu1 %v2494_v2 }
 0x3c6   :  { %1606 = vmatpush.bf16.msra.mxu2 %v2498_v3  ;;  %1621 = vmatpush.bf16.msra.mxu3 %v2474_v15 }
 0x3c8   :  { %1593 = vmatpush.bf16.msra.mxu1 %v2466_v10 }
 0x3ca   :  { %1607 = vmatpush.bf16.msra.mxu2 %v2470_v14  ;;  %1622 = vmatpush.bf16.msra.mxu3 %v2446_v25 }
 0x3cc   :  { %1594 = vmatpush.bf16.msra.mxu1 %v2438_v22 }
 0x3ce   :  { %1608 = vmatpush.bf16.msra.mxu2 %v2442_v23  ;;  %1623 = vmatpush.bf16.msra.mxu3 %v2418_v34 }
 0x3d0   :  { %1595 = vmatpush.bf16.msra.mxu1 %v2410_v31  ;;  %v1237_v31 = vperm.slane %v3670_v51, 6 }
 0x3d2   :  { %1609 = vmatpush.bf16.msra.mxu2 %v2414_v32  ;;  %1624 = vmatpush.bf16.msra.mxu3 %v2390_v43 }
 0x3d4   :  { %1596 = vmatpush.bf16.msra.mxu1 %v2382_v40 }
 0x3d6   :  { %1610 = vmatpush.bf16.msra.mxu2 %v2386_v41 }
 0x440   :  { %v1157_v42 = vpop.f32.mrf.mxu0 }
 0x441   :  { %v1158_v45 = vadd.f32 %v2774_v44, %v1157_v42 }
 0x443   :  { %2795 = vtanh.f32 %v1158_v45 }
 0x448   :  { %v1159_v46 = vpop.f32.mrf.mxu0 }
 0x449   :  { %v1160_v47 = vadd.f32 %v2774_v44, %v1159_v46  ;;  %v2796_v48 = vpop.eup %2795 }
 0x44b   :  { %2797 = vtanh.f32 %v1160_v47 }
 0x451   :  { %v2798_v49 = vpop.eup %2797 }
 0x452   :  { %v1164_v50 = vpack.c.bf16 %v2798_v49, %v2796_v48 }
 0x454   :  { %1541 = vmatmul.bf16.vlgmr.msrb.gmra.mxu1 %v1164_v50  ;;  %1555 = vmatmul.bf16.vlgmr.msrb.gmra.mxu2 %v1164_v50 }
 0x455   :  { %1569 = vmatmul.bf16.vlgmr.msrb.gmra.mxu3 %v1164_v50  ;;  %1583 = vmatmul.bf16.vlgmr.msra.gmra.mxu0 %v1164_v50 }
 0x464   :  { %1597 = vmatmul.bf16.vlgmr.msra.gmra.mxu1 %v1164_v50  ;;  %1611 = vmatmul.bf16.vlgmr.msra.gmra.mxu2 %v1164_v50 }
 0x465   :  { %1625 = vmatmul.bf16.vlgmr.msra.gmra.mxu3 %v1164_v50 }
 0x4d1   :  { %v1542_v54 = vpop.f32.mrf.mxu1 }
 0x4d2   :  { %v1543_v55 = vadd.f32 %v1542_v54, %v1231_v52  ;;  %v1584_v56 = vpop.f32.mrf.mxu0 }
 0x4d3   :  { %v1585_v57 = vadd.f32 %v1584_v56, %v1234_v53 }
 0x4d4   :  { %v2587_v58 = vmul.f32 -1.442695, %v1543_v55 }
 0x4d5   :  { %v2590_v60 = vmul.f32 -1.442695, %v1585_v57 }
 0x4d6   :  { %2799 = vpow2.f32 %v2587_v58 }
 0x4d7   :  { %2801 = vpow2.f32 %v2590_v60  ;;  %v1556_v62 = vpop.f32.mrf.mxu2 }
 0x4d8   :  { %v1557_v63 = vadd.f32 %v1556_v62, %v1232_v59  ;;  %v1570_v0 = vpop.f32.mrf.mxu3 }
 0x4d9   :  { %v1571_v1 = vadd.f32 %v1570_v0, %v1233_v61  ;;  %v1544_v2 = vpop.f32.mrf.mxu1 }
 0x4da   :  { %v2588_v3 = vmul.f32 -1.442695, %v1557_v63  ;;  %v1545_v4 = vadd.f32 %v1544_v2, %v1231_v52  ;;  %v1586_v5 = vpop.f32.mrf.mxu0 }
 0x4db   :  { %v2589_v6 = vmul.f32 -1.442695, %v1571_v1  ;;  %v1587_v7 = vadd.f32 %v1586_v5, %v1234_v53 }
 0x4dc   :  { %v2800_v8 = vpop.eup %2799  ;;  %2803 = vpow2.f32 %v2588_v3  ;;  %v2594_v9 = vmul.f32 -1.442695, %v1545_v4 }
 0x4dd   :  { %v2802_v10 = vpop.eup %2801  ;;  %v3676_v11 = vadd.f32 1.0, %v2800_v8  ;;  %2805 = vpow2.f32 %v2589_v6  ;;  %v2597_v12 = vmul.f32 -1.442695, %v1587_v7 }
 0x4de   :  { %v3678_v13 = vadd.f32 1.0, %v2802_v10  ;;  %2807 = vpow2.f32 %v2594_v9 }
 0x4df   :  { %2809 = vrcp.f32 %v3676_v11  ;;  %v1558_v14 = vpop.f32.mrf.mxu2  ;;  %v1696_v20 = vand.u32 2147483647, %v3676_v11  ;;  %v1698_v21 = vand.u32 2147483648, %v3676_v11  ;;  %vm1692_vm0 = vweird.f32 %v3676_v11 }
 0x4e0   :  { %2811 = vrcp.f32 %v3678_v13  ;;  %v1572_v15 = vpop.f32.mrf.mxu3  ;;  %v1559_v17 = vadd.f32 %v1558_v14, %v1232_v59  ;;  %v1741_v23 = vand.u32 2147483647, %v3678_v13  ;;  %v1743_v24 = vand.u32 2147483648, %v3678_v13 }
 0x4e1   :  { %2813 = vpow2.f32 %v2597_v12  ;;  %v1598_v18 = vpop.f32.mrf.mxu1  ;;  %v1573_v26 = vadd.f32 %v1572_v15, %v1233_v61  ;;  %vm1737_vm1 = vweird.f32 %v3678_v13  ;;  %vm3699_vm2 = vcmp.eq.f32.partialorder %v1696_v20, 8.507059e+37 }
 0x4e2   :  { %v2804_v19 = vpop.eup %2803  ;;  %v1599_v29 = vadd.f32 %v1598_v18, %v1235_v16  ;;  %v2595_v33 = vmul.f32 -1.442695, %v1559_v17  ;;  %v1699_v37 = vor.u32 1.1754944e-38, %v1698_v21  ;;  %vm3705_vm3 = vcmp.eq.f32.partialorder %v1741_v23, 8.507059e+37 }
 0x4e3   :  { %v2806_v22 = vpop.eup %2805  ;;  %v3687_v25 = vadd.f32 1.0, %v2804_v19  ;;  %v1744_v41 = vor.u32 1.1754944e-38, %v1743_v24  ;;  %v3709_v42 = vmul.f32 -1.442695, %v1573_v26 }
 0x4e4   :  { %v2808_v27 = vpop.eup %2807  ;;  %v3689_v28 = vadd.f32 1.0, %v2806_v22  ;;  %v3714_v46 = vmul.f32 -1.442695, %v1599_v29 }
 0x4e5   :  { %v2810_v32 = vpop.eup %2809  ;;  %2815 = vrcp.f32 %v3687_v25  ;;  %v1711_v44 = vand.u32 2147483647, %v3687_v25  ;;  %v3712_v45 = vadd.f32 1.0, %v2808_v27  ;;  %v1713_v48 = vand.u32 2147483648, %v3687_v25 }
 0x4e6   :  { %v2812_v34 = vpop.eup %2811  ;;  %v1688_v35 = vmul.f32 %v2810_v32, %v3676_v11  ;;  %2817 = vrcp.f32 %v3689_v28  ;;  %vm1693_vm4 = vweird.f32 %v2810_v32  ;;  %v1726_v52 = vand.u32 2147483647, %v3689_v28 }
 0x4e7   :  { %v2814_v38 = vpop.eup %2813  ;;  %v1733_v39 = vmul.f32 %v2812_v34, %v3678_v13  ;;  %2819 = vpow2.f32 %v2595_v33  ;;  %vm1738_vm5 = vweird.f32 %v2812_v34  ;;  %vm1707_vm6 = vweird.f32 %v3687_v25  ;;  %v1612_v55 = vpop.f32.mrf.mxu2  ;;  %vm1694_vm9 = vmor %vm1692_vm0, %vm1693_vm4 }
 0x4e8   :  { %v1689_v43 = vsub.f32 1.0, %v1688_v35  ;;  %v3717_v49 = vadd.f32 1.0, %v2814_v38  ;;  %2821 = vrcp.f32 %v3712_v45  ;;  %vm1722_vm7 = vweird.f32 %v3689_v28  ;;  %vm1739_vm10 = vmor %vm1737_vm1, %vm1738_vm5  ;;  %v1626_v9 = vpop.f32.mrf.mxu3 }
 0x4e9   :  { %v1734_v47 = vsub.f32 1.0, %v1733_v39  ;;  %vm3724_vm8 = vcmp.eq.f32.partialorder %v1711_v44, 8.507059e+37  ;;  %v1714_v61 = vor.u32 1.1754944e-38, %v1713_v48  ;;  %v1728_v63 = vand.u32 2147483648, %v3689_v28 }
 0x4ea   :  { %v1690_v50 = vmul.f32 %v2810_v32, %v1689_v43  ;;  %2823 = vrcp.f32 %v3717_v49  ;;  %vm3737_vm11 = vcmp.eq.f32.partialorder %v1726_v52, 8.507059e+37  ;;  %v1613_v3 = vadd.f32 %v1612_v55, %v1236_v30 }
 0x4eb   :  { %v2816_v53 = vpop.eup %2815  ;;  %v1735_v54 = vmul.f32 %v2812_v34, %v1734_v47  ;;  %v1801_v8 = vand.u32 2147483647, %v3712_v45  ;;  %v1729_v15 = vor.u32 1.1754944e-38, %v1728_v63  ;;  %vm1797_vm14 = vweird.f32 %v3712_v45 }
 0x4ec   :  { %v2818_v56 = vpop.eup %2817  ;;  %v1691_v57 = vadd.f32 %v2810_v32, %v1690_v50  ;;  %v1703_v58 = vmul.f32 %v2816_v53, %v3687_v25  ;;  %vm1708_vm12 = vweird.f32 %v2816_v53  ;;  %v1803_v20 = vand.u32 2147483648, %v3712_v45 }
 0x4ed   :  { %v1736_v60 = vadd.f32 %v2812_v34, %v1735_v54  ;;  %v1718_v62 = vmul.f32 %v2818_v56, %v3689_v28  ;;  %v2820_v4 = vpop.eup %2819  ;;  %vm1723_vm13 = vweird.f32 %v2818_v56  ;;  %vm1709_vm15 = vmor %vm1707_vm6, %vm1708_vm12  ;;  %vm3762_vm0 = vcmp.eq.f32.partialorder %v1801_v8, 8.507059e+37 }
 0x4ee   :  { %v1695_v0 = vsel %vm1694_vm9, %v2810_v32, %v1691_v57  ;;  %v1704_v1 = vsub.f32 1.0, %v1703_v58  ;;  %v2822_v10 = vpop.eup %2821  ;;  %v3751_v13 = vadd.f32 1.0, %v2820_v4  ;;  %vm1724_vm1 = vmor %vm1722_vm7, %vm1723_vm13  ;;  %v1848_v27 = vand.u32 2147483648, %v3717_v49 }
 0x4ef   :  { %v1700_v5 = vsel %vm3699_vm2, %v1699_v37, %v1695_v0  ;;  %v1740_v6 = vsel %vm1739_vm10, %v2812_v34, %v1736_v60  ;;  %v1719_v7 = vsub.f32 1.0, %v1718_v62  ;;  %v1793_v17 = vmul.f32 %v2822_v10, %v3712_v45  ;;  %v1600_v34 = vpop.f32.mrf.mxu1  ;;  %v1614_v36 = vpop.f32.mrf.mxu2 }
 0x4f0   :  { %1897 = vst [vmem:[%s3915_s18] sm:$0xff] %v1700_v5  ;;  %v1745_v11 = vsel %vm3705_vm3, %v1744_v41, %v1740_v6  ;;  %v1705_v12 = vmul.f32 %v2816_v53, %v1704_v1  ;;  %v2824_v18 = vpop.eup %2823  ;;  %2825 = vrcp.f32 %v3751_v13  ;;  %vm1798_vm2 = vweird.f32 %v2822_v10  ;;  %v1628_v52 = vpop.f32.mrf.mxu3 }
 0x4f1   :  { %1900 = vst [vmem:[%s3915_s18 + $0x18] sm:$0xff] %v1745_v11  ;;  %v1720_v14 = vmul.f32 %v2818_v56, %v1719_v7  ;;  %v1794_v22 = vsub.f32 1.0, %v1793_v17  ;;  %v1838_v24 = vmul.f32 %v2824_v18, %v3717_v49  ;;  %2827 = vpow2.f32 %v3709_v42  ;;  %vm1799_vm4 = vmor %vm1797_vm14, %vm1798_vm2 }
 0x4f2   :  { %v1706_v19 = vadd.f32 %v2816_v53, %v1705_v12  ;;  %vm1843_vm3 = vweird.f32 %v2824_v18  ;;  %v1846_v35 = vand.u32 2147483647, %v3717_v49  ;;  %2829 = vpow2.f32 %v3714_v46 }
 0x4f3   :  { %v1721_v21 = vadd.f32 %v2818_v56, %v1720_v14  ;;  %v1795_v32 = vmul.f32 %v2822_v10, %v1794_v22  ;;  %v1839_v33 = vsub.f32 1.0, %v1838_v24  ;;  %v2592_v39 = vmul.f32 -1.442695, %v1613_v3 }
 0x4f4   :  { %v1710_v26 = vsel %vm1709_vm15, %v2816_v53, %v1706_v19  ;;  %v1627_v40 = vadd.f32 %v1626_v9, %v1237_v31  ;;  %v1804_v42 = vor.u32 1.1754944e-38, %v1803_v20  ;;  %vm1842_vm5 = vweird.f32 %v3717_v49 }
 0x4f5   :  { %v1715_v25 = vsel %vm3724_vm8, %v1714_v61, %v1710_v26  ;;  %v1725_v29 = vsel %vm1724_vm1, %v2818_v56, %v1721_v21  ;;  %v1796_v37 = vadd.f32 %v2822_v10, %v1795_v32  ;;  %v1840_v38 = vmul.f32 %v2824_v18, %v1839_v33  ;;  %vm1844_vm6 = vmor %vm1842_vm5, %vm1843_vm3 }
 0x4f6   :  { %1898 = vst [vmem:[%s3915_s18 + $0x8] sm:$0xff] %v1715_v25  ;;  %v1730_v28 = vsel %vm3737_vm11, %v1729_v15, %v1725_v29  ;;  %v2826_v41 = vpop.eup %2825  ;;  %v1849_v43 = vor.u32 1.1754944e-38, %v1848_v27  ;;  %v1601_v44 = vadd.f32 %v1600_v34, %v1235_v16  ;;  %v1615_v50 = vadd.f32 %v1614_v36, %v1236_v30 }
 0x4f7   :  { %1899 = vst [vmem:[%s3915_s18 + $0x10] sm:$0xff] %v1730_v28  ;;  %v1800_v46 = vsel %vm1799_vm4, %v2822_v10, %v1796_v37  ;;  %v1841_v47 = vadd.f32 %v2824_v18, %v1840_v38  ;;  %v1808_v48 = vmul.f32 %v2826_v41, %v3751_v13  ;;  %v2828_v53 = vpop.eup %2827  ;;  %2831 = vpow2.f32 %v2592_v39 }
 0x4f8   :  { %v1805_v45 = vsel %vm3762_vm0, %v1804_v42, %v1800_v46  ;;  %v2593_v49 = vmul.f32 -1.442695, %v1627_v40  ;;  %v2598_v54 = vmul.f32 -1.442695, %v1601_v44  ;;  %vm1847_vm7 = vcmp.eq.f32.partialorder %v1846_v35, 8.507059e+37  ;;  %v2830_v57 = vpop.eup %2829 }
 0x4f9   :  { %1904 = vst [vmem:[%s3915_s18 + $0x38] sm:$0xff] %v1805_v45  ;;  %v1845_v16 = vsel %vm1844_vm6, %v2824_v18, %v1841_v47  ;;  %v1809_v55 = vsub.f32 1.0, %v1808_v48  ;;  %v1682_v56 = vadd.f32 1.0, %v2828_v53  ;;  %v1818_v58 = vand.u32 2147483648, %v3751_v13 }
 0x4fa   :  { %v1850_v30 = vsel %vm1847_vm7, %v1849_v43, %v1845_v16  ;;  %2833 = vpow2.f32 %v2593_v49  ;;  %v1629_v59 = vadd.f32 %v1628_v52, %v1237_v31  ;;  %vm1813_vm8 = vweird.f32 %v2826_v41 }
 0x4fb   :  { %1907 = vst [vmem:[%s3915_s18 + $0x50] sm:$0xff] %v1850_v30  ;;  %v1810_v60 = vmul.f32 %v2826_v41, %v1809_v55  ;;  %v1816_v61 = vand.u32 2147483647, %v3751_v13  ;;  %2835 = vrcp.f32 %v1682_v56  ;;  %v3807_v62 = vadd.f32 1.0, %v2830_v57 }
 0x4fc   :  { %2837 = vpow2.f32 %v2598_v54  ;;  %v2599_v63 = vmul.f32 -1.442695, %v1615_v50  ;;  %vm1812_vm9 = vweird.f32 %v3751_v13  ;;  %v1819_v51 = vor.u32 1.1754944e-38, %v1818_v58 }
 0x4fd   :  { %v1811_v0 = vadd.f32 %v2826_v41, %v1810_v60  ;;  %v2832_v1 = vpop.eup %2831  ;;  %vm1814_vm10 = vmor %vm1812_vm9, %vm1813_vm8  ;;  %2839 = vrcp.f32 %v3807_v62  ;;  %v2600_v31 = vmul.f32 -1.442695, %v1629_v59  ;;  %vm1817_vm11 = vcmp.eq.f32.partialorder %v1816_v61, 8.507059e+37 }
 0x4fe   :  { %v3811_v3 = vadd.f32 1.0, %v2832_v1  ;;  %2841 = vpow2.f32 %v2599_v63  ;;  %v1831_v10 = vand.u32 2147483647, %v1682_v56  ;;  %v1833_v11 = vand.u32 2147483648, %v1682_v56 }
 0x4ff   :  { %v1815_v2 = vsel %vm1814_vm10, %v2826_v41, %v1811_v0  ;;  %v1756_v15 = vand.u32 2147483647, %v3807_v62  ;;  %vm1827_vm12 = vweird.f32 %v1682_v56  ;;  %v1758_v20 = vand.u32 2147483648, %v3807_v62 }
 0x500   :  { %v2834_v4 = vpop.eup %2833  ;;  %v1820_v5 = vsel %vm1817_vm11, %v1819_v51, %v1815_v2  ;;  %2843 = vrcp.f32 %v3811_v3  ;;  %vm3826_vm14 = vcmp.eq.f32.partialorder %v1831_v10, 8.507059e+37  ;;  %v1834_v23 = vor.u32 1.1754944e-38, %v1833_v11 }
 0x501   :  { %v2836_v6 = vpop.eup %2835  ;;  %1905 = vst [vmem:[%s3915_s18 + $0x40] sm:$0xff] %v1820_v5  ;;  %v3817_v9 = vadd.f32 1.0, %v2834_v4  ;;  %2845 = vpow2.f32 %v2600_v31  ;;  %vm1752_vm15 = vweird.f32 %v3807_v62  ;;  %vm3831_vm0 = vcmp.eq.f32.partialorder %v1756_v15, 8.507059e+37 }
 0x502   :  { %v2838_v7 = vpop.eup %2837  ;;  %v1823_v8 = vmul.f32 %v2836_v6, %v1682_v56  ;;  %vm1828_vm13 = vweird.f32 %v2836_v6  ;;  %v1771_v32 = vand.u32 2147483647, %v3811_v3  ;;  %v1773_v34 = vand.u32 2147483648, %v3811_v3 }
 0x503   :  { %v3819_v12 = vadd.f32 1.0, %v2838_v7  ;;  %v2840_v13 = vpop.eup %2839  ;;  %2847 = vrcp.f32 %v3817_v9  ;;  %vm1829_vm1 = vmor %vm1827_vm12, %vm1828_vm13  ;;  %v1759_v37 = vor.u32 1.1754944e-38, %v1758_v20  ;;  %vm1767_vm3 = vweird.f32 %v3811_v3 }
 0x504   :  { %v1824_v14 = vsub.f32 1.0, %v1823_v8  ;;  %v1748_v17 = vmul.f32 %v2840_v13, %v3807_v62  ;;  %v2842_v18 = vpop.eup %2841  ;;  %vm1753_vm2 = vweird.f32 %v2840_v13  ;;  %vm3852_vm6 = vcmp.eq.f32.partialorder %v1771_v32, 8.507059e+37 }
 0x505   :  { %2849 = vrcp.f32 %v3819_v12  ;;  %v3839_v28 = vadd.f32 1.0, %v2842_v18  ;;  %vm1754_vm4 = vmor %vm1752_vm15, %vm1753_vm2  ;;  %v1774_v48 = vor.u32 1.1754944e-38, %v1773_v34  ;;  %v1786_v49 = vand.u32 2147483647, %v3817_v9 }
 0x506   :  { %v1825_v19 = vmul.f32 %v2836_v6, %v1824_v14  ;;  %v2844_v21 = vpop.eup %2843  ;;  %v1749_v24 = vsub.f32 1.0, %v1748_v17  ;;  %v1788_v54 = vand.u32 2147483648, %v3817_v9  ;;  %vm1782_vm9 = vweird.f32 %v3817_v9 }
 0x507   :  { %v2846_v26 = vpop.eup %2845  ;;  %v1763_v29 = vmul.f32 %v2844_v21, %v3811_v3  ;;  %vm1768_vm5 = vweird.f32 %v2844_v21  ;;  %2851 = vrcp.f32 %v3839_v28  ;;  %v1861_v57 = vand.u32 2147483647, %v3819_v12 }
 0x508   :  { %v1826_v27 = vadd.f32 %v2836_v6, %v1825_v19  ;;  %v1750_v33 = vmul.f32 %v2840_v13, %v1749_v24  ;;  %v3845_v42 = vadd.f32 1.0, %v2846_v26  ;;  %vm1769_vm7 = vmor %vm1767_vm3, %vm1768_vm5  ;;  %v1863_v30 = vand.u32 2147483648, %v3819_v12 }
 0x509   :  { %v2848_v35 = vpop.eup %2847  ;;  %v1764_v38 = vsub.f32 1.0, %v1763_v29  ;;  %v1789_v62 = vor.u32 1.1754944e-38, %v1788_v54  ;;  %vm1857_vm12 = vweird.f32 %v3819_v12  ;;  %vm1787_vm13 = vcmp.eq.f32.partialorder %v1786_v49, 8.507059e+37 }
 0x50a   :  { %v1830_v36 = vsel %vm1829_vm1, %v2836_v6, %v1826_v27  ;;  %v1751_v40 = vadd.f32 %v2840_v13, %v1750_v33  ;;  %v1778_v41 = vmul.f32 %v2848_v35, %v3817_v9  ;;  %vm1783_vm8 = vweird.f32 %v2848_v35 }
 0x50b   :  { %v1835_v39 = vsel %vm3826_vm14, %v1834_v23, %v1830_v36  ;;  %v2850_v43 = vpop.eup %2849  ;;  %v1765_v44 = vmul.f32 %v2844_v21, %v1764_v38  ;;  %2853 = vrcp.f32 %v3845_v42  ;;  %vm1784_vm11 = vmor %vm1782_vm9, %vm1783_vm8  ;;  %v1864_v31 = vor.u32 1.1754944e-38, %v1863_v30 }
 0x50c   :  { %1906 = vst [vmem:[%s3915_s18 + $0x48] sm:$0xff] %v1835_v39  ;;  %v1755_v47 = vsel %vm1754_vm4, %v2840_v13, %v1751_v40  ;;  %v1779_v50 = vsub.f32 1.0, %v1778_v41  ;;  %v1853_v52 = vmul.f32 %v2850_v43, %v3819_v12  ;;  %vm1858_vm10 = vweird.f32 %v2850_v43 }
 0x50d   :  { %v1760_v53 = vsel %vm3831_vm0, %v1759_v37, %v1755_v47  ;;  %v1766_v45 = vadd.f32 %v2844_v21, %v1765_v44  ;;  %v2852_v61 = vpop.eup %2851  ;;  %vm1859_vm14 = vmor %vm1857_vm12, %vm1858_vm10  ;;  %vm1862_vm15 = vcmp.eq.f32.partialorder %v1861_v57, 8.507059e+37  ;;  %v1878_v6 = vand.u32 2147483648, %v3839_v28 }
 0x50e   :  { %1901 = vst [vmem:[%s3915_s18 + $0x20] sm:$0xff] %v1760_v53  ;;  %v1780_v16 = vmul.f32 %v2848_v35, %v1779_v50  ;;  %v1854_v55 = vsub.f32 1.0, %v1853_v52  ;;  %v1868_v1 = vmul.f32 %v2852_v61, %v3839_v28  ;;  %vm1873_vm0 = vweird.f32 %v2852_v61 }
 0x50f   :  { %v1770_v56 = vsel %vm1769_vm7, %v2844_v21, %v1766_v45  ;;  %v1876_v9 = vand.u32 2147483647, %v3839_v28  ;;  %vm1872_vm1 = vweird.f32 %v3839_v28  ;;  %v1893_v12 = vand.u32 2147483648, %v3845_v42 }
 0x510   :  { %v1775_v58 = vsel %vm3852_vm6, %v1774_v48, %v1770_v56  ;;  %v1781_v59 = vadd.f32 %v2848_v35, %v1780_v16  ;;  %v1855_v60 = vmul.f32 %v2850_v43, %v1854_v55  ;;  %v1869_v4 = vsub.f32 1.0, %v1868_v1  ;;  %vm1874_vm2 = vmor %vm1872_vm1, %vm1873_vm0 }
 0x511   :  { %1902 = vst [vmem:[%s3915_s18 + $0x28] sm:$0xff] %v1775_v58  ;;  %v2854_v2 = vpop.eup %2853  ;;  %v1879_v13 = vor.u32 1.1754944e-38, %v1878_v6  ;;  %v1891_v15 = vand.u32 2147483647, %v3845_v42  ;;  %vm1877_vm4 = vcmp.eq.f32.partialorder %v1876_v9, 8.507059e+37  ;;  %vm1887_vm5 = vweird.f32 %v3845_v42 }
 0x512   :  { %v1785_v63 = vsel %vm1784_vm11, %v2848_v35, %v1781_v59  ;;  %v1856_v0 = vadd.f32 %v2850_v43, %v1855_v60  ;;  %v1883_v7 = vmul.f32 %v2854_v2, %v3845_v42  ;;  %v1870_v8 = vmul.f32 %v2852_v61, %v1869_v4 }
 0x513   :  { %v1790_v51 = vsel %vm1787_vm13, %v1789_v62, %v1785_v63  ;;  %vm1888_vm3 = vweird.f32 %v2854_v2  ;;  %v1894_v20 = vor.u32 1.1754944e-38, %v1893_v12  ;;  %vm1892_vm7 = vcmp.eq.f32.partialorder %v1891_v15, 8.507059e+37 }
 0x514   :  { %1903 = vst [vmem:[%s3915_s18 + $0x30] sm:$0xff] %v1790_v51  ;;  %v1860_v3 = vsel %vm1859_vm14, %v2850_v43, %v1856_v0  ;;  %v1884_v10 = vsub.f32 1.0, %v1883_v7  ;;  %v1871_v11 = vadd.f32 %v2852_v61, %v1870_v8  ;;  %vm1889_vm6 = vmor %vm1887_vm5, %vm1888_vm3 }
 0x515   :  { %v1865_v5 = vsel %vm1862_vm15, %v1864_v31, %v1860_v3 }
 0x516   :  { %1908 = vst [vmem:[%s3915_s18 + $0x58] sm:$0xff] %v1865_v5  ;;  %v1885_v14 = vmul.f32 %v2854_v2, %v1884_v10  ;;  %v1875_v17 = vsel %vm1874_vm2, %v2852_v61, %v1871_v11 }
 0x517   :  { %v1880_v18 = vsel %vm1877_vm4, %v1879_v13, %v1875_v17 }
 0x518   :  { %v1886_v19 = vadd.f32 %v2854_v2, %v1885_v14  ;;  %1909 = vst [vmem:[%s3915_s18 + $0x60] sm:$0xff] %v1880_v18 }
 0x51a   :  { %v1890_v21 = vsel %vm1889_vm6, %v2854_v2, %v1886_v19 }
 0x51b   :  { %v1895_v22 = vsel %vm1892_vm7, %v1894_v20, %v1890_v21 }
 0x51c   :  { %1910 = vst [vmem:[%s3915_s18 + $0x68] sm:$0xff] %v1895_v22 }

</bundles_post_ra>
